<compile_context>
chip_gen: v7x
topology: tpu7x:2x2x1
jax: 0.10.0
libtpu: 0.0.40
codegen_flags: <defaults>
</compile_context>

<pallas_src>
import math
import functools

import jax
import jax.numpy as jnp
from jax.experimental import pallas as pl
from jax.experimental.pallas import tpu as pltpu


def _round_up(x, m):
    return ((x + m - 1) // m) * m


# ------------------------------------------------------------------------
# Pallas kernel
# ------------------------------------------------------------------------
def _nvctm_kernel(ctf_length, K, Kp, P,
                  x_ref,
                  w1_ref, b1_ref, w2_ref, b2_ref,
                  wh_ref, bh_ref, wd_ref, bd_ref,
                  recon_ref, packed_ref):
    f32 = jnp.float32
    x = x_ref[...]                                              # (TB, V) f32

    # ---- encoder MLP (bf16 MXU operands, f32 accumulation / elementwise) ----
    h = jnp.tanh(jnp.dot(x.astype(jnp.bfloat16), w1_ref[...],
                         preferred_element_type=f32) + b1_ref[...])
    h = jnp.tanh(jnp.dot(h.astype(jnp.bfloat16), w2_ref[...],
                         preferred_element_type=f32) + b2_ref[...])
    # TODO(synk): nn.Dropout(0.8) of the training path is omitted (eval mode).

    # ---- fused mean/logvar/v0 heads (BN folded in, lane-aligned Kp slices) ----
    heads = jnp.dot(h.astype(jnp.bfloat16), wh_ref[...],
                    preferred_element_type=f32) + bh_ref[...]
    pm = heads[:, 0:K]                         # posterior_mean (BN folded)
    plv = heads[:, Kp:Kp + K]                  # posterior_logvar (BN folded)
    v0 = heads[:, 2 * Kp:2 * Kp + K]
    pvar = jnp.exp(plv)                        # posterior_var

    # ---- Householder chain in compact-WY form (no (TB,K,K) tensors) ----
    r = ctf_length + 1
    vs, nsqs, taus = [], [], []

    def push(u):
        nsq = jnp.sum(u * u, axis=1, keepdims=True)
        vs.append(u)
        nsqs.append(nsq)
        taus.append(2.0 / nsq)                 # exact divide (keeps H orthogonal)

    push(v0)                                   # reflector 0 comes from the v0 head
    v = None
    for i in range(ctf_length):                # static ctf_length -> unrolled
        if i == 0:
            v = pm
        else:                                  # v <- H(prev) @ v  (rank-1 update)
            w, tw = vs[-1], taus[-1]
            v = v - tw * w * jnp.sum(w * v, axis=1, keepdims=True)
        push(v)

    # z = U @ posterior_mean : apply reflectors right-to-left (rank-1 updates).
    z = pm
    for j in range(r - 1, -1, -1):
        z = z - taus[j] * vs[j] * jnp.sum(vs[j] * z, axis=1, keepdims=True)

    # r x r Gram matrices; each entry is a (TB,1) per-sample scalar.
    G, GD = {}, {}
    for i in range(r):
        vip = vs[i] * pvar
        for j in range(i, r):
            G[(i, j)] = nsqs[i] if i == j else jnp.sum(
                vs[i] * vs[j], axis=1, keepdims=True)
            GD[(i, j)] = jnp.sum(vip * vs[j], axis=1, keepdims=True)

    def g(i, j):
        return G[(i, j)] if i <= j else G[(j, i)]

    def gd(i, j):
        return GD[(i, j)] if i <= j else GD[(j, i)]

    # WY triangular factor T (upper triangular; dlarft forward recursion).
    T = {}
    for j in range(r):
        for i in range(j):
            acc = T[(i, i)] * g(i, j)
            for m in range(i + 1, j):
                acc = acc + T[(i, m)] * g(m, j)
            T[(i, j)] = -taus[j] * acc
        T[(j, j)] = taus[j]

    # trace(U diag(pvar) U) = sum(pvar) - 2*tr(T GD) + tr(T G T GD)
    sum_pvar = jnp.sum(pvar, axis=1, keepdims=True)
    tr_lin = None
    for i in range(r):
        for j in range(i, r):
            term = T[(i, j)] * gd(i, j)
            tr_lin = term if tr_lin is None else tr_lin + term

    M = {}                                     # M = T @ G
    for i in range(r):
        for j in range(r):
            acc = None
            for m in range(i, r):              # T[i,m] == 0 for m < i
                term = T[(i, m)] * g(m, j)
                acc = term if acc is None else acc + term
            M[(i, j)] = acc
    tr_quad = None                             # tr((M @ T) GD)
    for i in range(r):
        for j in range(r):
            acc = None
            for m in range(j + 1):             # T[m,j] == 0 for m > j
                term = M[(i, m)] * T[(m, j)]
                acc = term if acc is None else acc + term
            term = acc * gd(i, j)
            tr_quad = term if tr_quad is None else tr_quad + term

    trace = sum_pvar - 2.0 * tr_lin + tr_quad

    # ---- decoder + softmax + losses (prior_mean=0, prior_var=1, prior_logvar=0) ----
    logits = jnp.dot(z.astype(jnp.bfloat16), wd_ref[...],
                     preferred_element_type=f32) + bd_ref[...]
    mx = jnp.max(logits, axis=1, keepdims=True)
    e = jnp.exp(logits - mx)
    sum_e = jnp.sum(e, axis=1, keepdims=True)
    recon = e * pl.reciprocal(sum_e, approx=True)
    NL = -jnp.sum(x * jnp.log(recon + 1e-10), axis=1, keepdims=True)

    diff_term = jnp.sum(z * z, axis=1, keepdims=True)     # (U pm - 0)^2 / 1
    logvar_div = -jnp.sum(plv, axis=1, keepdims=True)     # 0 - posterior_logvar
    KLD = 0.5 * (trace + diff_term + logvar_div - float(K))

    # ---- stores: recon + one lane-dense packed slab [pm | z | NL | KLD | 0...] ----
    recon_ref[...] = recon.astype(recon_ref.dtype)
    packed_ref[...] = jnp.zeros(packed_ref.shape, packed_ref.dtype)
    packed_ref[:, 0:K] = pm
    packed_ref[:, K:2 * K] = z
    packed_ref[:, 2 * K:2 * K + 1] = NL
    packed_ref[:, 2 * K + 1:2 * K + 2] = KLD


# ------------------------------------------------------------------------
# One-time parameter preparation (fold BN, fuse+pad heads, bf16 weights)
# ------------------------------------------------------------------------
def prepare_params(params, num_topic):
    K = num_topic
    Kp = _round_up(K, 128)

    def pad_cols(a):
        return jnp.pad(a, ((0, 0), (0, Kp - a.shape[1])))

    # Fold eval-mode BatchNorm: (h@W + b)*s + t == h@(W*s) + (b*s + t)
    Wm = params['Wm'] * params['bnm_s']
    bm = params['bm'] * params['bnm_s'] + params['bnm_b']
    Wlv = params['Wlv'] * params['bnlv_s']
    blv = params['blv'] * params['bnlv_s'] + params['bnlv_b']

    Whead = jnp.concatenate(
        [pad_cols(Wm), pad_cols(Wlv), pad_cols(params['Wv0'])],
        axis=1).astype(jnp.bfloat16)
    bhead = jnp.concatenate(
        [pad_cols(bm), pad_cols(blv), pad_cols(params['bv0'])],
        axis=1).astype(jnp.float32)

    return dict(
        W1=params['W1'].astype(jnp.bfloat16), b1=params['b1'],
        W2=params['W2'].astype(jnp.bfloat16), b2=params['b2'],
        Whead=Whead, bhead=bhead,
        Wd=params['Wd'].astype(jnp.bfloat16), bd=params['bd'],
        Kp=Kp)


# ------------------------------------------------------------------------
# Wrapper
# ------------------------------------------------------------------------
def nvctm_forward(doc_freq_vecs, prep, ctf_length, num_topic,
                  recon_dtype=jnp.float32):
    B, V = doc_freq_vecs.shape
    K = num_topic
    Kp = int(prep['Kp'])
    Hd = prep['W1'].shape[1]
    P = _round_up(2 * K + 2, 128)              # packed [pm|z|NL|KLD|pad] width

    tile_b = B if B <= 128 else 128
    assert B % tile_b == 0, "batch must be a multiple of the batch tile"
    grid = (B // tile_b,)

    def batch_blk(width):
        return pl.BlockSpec((tile_b, width), lambda i: (i, 0))

    def resident(a):
        # Full-array, VMEM-resident block (constant index_map).
        return pl.BlockSpec(tuple(a.shape), lambda i, _n=a.ndim: (0,) * _n)

    weights = (prep['W1'], prep['b1'], prep['W2'], prep['b2'],
               prep['Whead'], prep['bhead'], prep['Wd'], prep['bd'])
    inputs = (doc_freq_vecs,) + weights
    in_specs = [batch_blk(V)] + [resident(a) for a in weights]

    out_shape = (
        jax.ShapeDtypeStruct((B, V), recon_dtype),   # recon
        jax.ShapeDtypeStruct((B, P), jnp.float32),   # [pm | z | NL | KLD | pad]
    )
    out_specs = (batch_blk(V), batch_blk(P))

    # VMEM budget: double-buffered batch tiles + resident weights + temporaries
    # (no (TB,K,K) Householder temporaries anymore).
    def nbytes(a):
        return int(a.size) * a.dtype.itemsize
    r = ctf_length + 1
    est = (2 * tile_b * V * 4
           + 2 * (tile_b * V * jnp.dtype(recon_dtype).itemsize + tile_b * P * 4)
           + 2 * sum(nbytes(a) for a in weights)
           + tile_b * (2 * Hd + 3 * Kp + 4 * V + (r + 6) * K) * 4)
    vmem_limit = int(max(16 * 2 ** 20, min(48 * 2 ** 20, 2 * est)))

    kernel = functools.partial(_nvctm_kernel, ctf_length, K, Kp, P)
    recon, packed = pl.pallas_call(
        kernel,
        out_shape=out_shape,
        grid_spec=pltpu.PrefetchScalarGridSpec(
            num_scalar_prefetch=0,
            grid=grid,
            in_specs=in_specs,
            out_specs=out_specs),
        compiler_params=pltpu.CompilerParams(
            dimension_semantics=("parallel",),
            vmem_limit_bytes=vmem_limit),
    )(*inputs)

    pm = packed[:, 0:K]
    z = packed[:, K:2 * K]
    nl = packed[:, 2 * K]
    kld = packed[:, 2 * K + 1]
    loss = nl + kld
    # eval-path return: (posterior_mean, z, recon, (loss, NL, KLD) averaged)
    return pm, z, recon, (loss.mean(), nl.mean(), kld.mean())


# ------------------------------------------------------------------------
# Deterministic parameter init (mirrors nn.Linear defaults + decoder override)
# ------------------------------------------------------------------------
def init_params(key, num_input, n_hidden, num_topic, init_mult=1.0):
    V, H, K = num_input, n_hidden, num_topic
    ks = jax.random.split(key, 12)

    def linear(kw, kb, fan_in, fan_out):
        bound = 1.0 / math.sqrt(fan_in)
        W = jax.random.uniform(kw, (fan_in, fan_out), jnp.float32, -bound, bound)
        b = jax.random.uniform(kb, (1, fan_out), jnp.float32, -bound, bound)
        return W, b

    W1, b1 = linear(ks[0], ks[1], V, H)
    W2, b2 = linear(ks[2], ks[3], H, H)
    Wm, bm = linear(ks[4], ks[5], H, K)
    Wlv, blv = linear(ks[6], ks[7], H, K)
    Wv0, bv0 = linear(ks[8], ks[9], H, K)

    # decoder: weight ~ N(0, std), bias default uniform
    std = 1.0 / math.sqrt(init_mult * (V + K))
    Wd = std * jax.random.normal(ks[10], (K, V), jnp.float32)
    bd_bound = 1.0 / math.sqrt(K)
    bd = jax.random.uniform(ks[11], (1, V), jnp.float32, -bd_bound, bd_bound)

    # eval-mode BatchNorm1d with fresh stats: gamma=1, beta=0, mean=0, var=1
    bn_eps = 1e-5
    bn_scale = jnp.full((1, K), 1.0 / math.sqrt(1.0 + bn_eps), jnp.float32)
    bn_shift = jnp.zeros((1, K), jnp.float32)

    return dict(W1=W1, b1=b1, W2=W2, b2=b2, Wm=Wm, bm=bm, Wlv=Wlv, blv=blv,
                Wv0=Wv0, bv0=bv0, Wd=Wd, bd=bd,
                bnm_s=bn_scale, bnm_b=bn_shift, bnlv_s=bn_scale, bnlv_b=bn_shift)


# ------------------------------------------------------------------------
# Pure-JAX reference (PyTorch semantics, full bmm chain, all f32)
# ------------------------------------------------------------------------
def nvctm_reference(x, p, ctf_length, num_topic):
    K = num_topic
    h = jnp.tanh(x @ p['W1'] + p['b1'])
    h = jnp.tanh(h @ p['W2'] + p['b2'])
    pm = (h @ p['Wm'] + p['bm']) * p['bnm_s'] + p['bnm_b']
    plv = (h @ p['Wlv'] + p['blv']) * p['bnlv_s'] + p['bnlv_b']
    pvar = jnp.exp(plv)
    v0 = h @ p['Wv0'] + p['bv0']
    B = x.shape[0]
    beye = jnp.broadcast_to(jnp.eye(K, dtype=jnp.float32)[None], (B, K, K))

    def hh(v):
        nsq = jnp.sum(v * v, axis=1)
        return beye - 2.0 * (v[:, :, None] * v[:, None, :]) / nsq[:, None, None]

    H = hh(v0); U = H; v = pm
    for i in range(ctf_length):
        if i > 0:
            v = jnp.einsum('bij,bj->bi', H, v)
        H = hh(v)
        U = jnp.einsum('bij,bjk->bik', U, H)
    z = jnp.einsum('bij,bj->bi', U, pm)
    recon = jax.nn.softmax(z @ p['Wd'] + p['bd'], axis=1)
    NL = -jnp.sum(x * jnp.log(recon + 1e-10), axis=1)
    t = jnp.einsum('bij,bjk->bik', U * pvar[:, None, :], U)
    trace = jnp.trace(t, axis1=1, axis2=2)
    KLD = 0.5 * (trace + jnp.sum(z * z, axis=1) + jnp.sum(-plv, axis=1) - K)
    loss = NL + KLD
    return pm, z, recon, (loss.mean(), NL.mean(), KLD.mean())


# ------------------------------------------------------------------------
if __name__ == "__main__":
    B, V, H, K = 8, 64, 32, 16          # batch, num_input, n_hidden, num_topic
    CTF = 3                              # ctf_length

    key = jax.random.PRNGKey(0)
    k_x, k_p = jax.random.split(key)
    doc_freq_vecs = jax.random.uniform(k_x, (B, V), jnp.float32)   # nonnegative freqs
    params = init_params(k_p, V, H, K, init_mult=1.0)
    prep = prepare_params(params, K)     # one-time: fold BN, fuse/pad heads, bf16

    pm, z, recon, (loss, nl, kld) = nvctm_forward(doc_freq_vecs, prep, CTF, K)
    jax.block_until_ready((pm, z, recon, loss, nl, kld))

    # sanity check against pure-JAX reference
    pm_r, z_r, recon_r, (loss_r, nl_r, kld_r) = nvctm_reference(doc_freq_vecs, params, CTF, K)
    assert pm.shape == (B, K) and z.shape == (B, K) and recon.shape == (B, V)
    assert jnp.allclose(pm, pm_r, rtol=2e-2, atol=2e-2)
    assert jnp.allclose(z, z_r, rtol=2e-2, atol=2e-2)
    assert jnp.allclose(recon.astype(jnp.float32), recon_r, rtol=2e-2, atol=2e-2)
    assert jnp.allclose(loss, loss_r, rtol=2e-2, atol=2e-2)

    print("KERNEL_OK")
</pallas_src>

<mosaic_0001>
module attributes {stable_mosaic.version = 11 : i64} {
  func.func @_nvctm_kernel(%arg0: i32, %arg1: memref<8x64xf32, #tpu.memory_space<vmem>>, %arg2: memref<64x32xbf16, #tpu.memory_space<vmem>>, %arg3: memref<1x32xf32, #tpu.memory_space<vmem>>, %arg4: memref<32x32xbf16, #tpu.memory_space<vmem>>, %arg5: memref<1x32xf32, #tpu.memory_space<vmem>>, %arg6: memref<32x384xbf16, #tpu.memory_space<vmem>>, %arg7: memref<1x384xf32, #tpu.memory_space<vmem>>, %arg8: memref<16x64xbf16, #tpu.memory_space<vmem>>, %arg9: memref<1x64xf32, #tpu.memory_space<vmem>>, %arg10: memref<8x64xf32, #tpu.memory_space<vmem>>, %arg11: memref<8x128xf32, #tpu.memory_space<vmem>>) attributes {dimension_semantics = [#tpu.dimension_semantics<parallel>], iteration_bounds = array<i64: 1>, scalar_prefetch = 0 : i64, scratch_operands = 0 : i64, tpu.core_type = #tpu.core_type<tc>, window_params = [{transform_indices = @transform_0, window_bounds = array<i64: 8, 64>}, {pipeline_mode = #tpu.pipeline_mode<synchronous>, transform_indices = @transform_1, window_bounds = array<i64: 64, 32>}, {pipeline_mode = #tpu.pipeline_mode<synchronous>, transform_indices = @transform_2, window_bounds = array<i64: 1, 32>}, {pipeline_mode = #tpu.pipeline_mode<synchronous>, transform_indices = @transform_3, window_bounds = array<i64: 32, 32>}, {pipeline_mode = #tpu.pipeline_mode<synchronous>, transform_indices = @transform_4, window_bounds = array<i64: 1, 32>}, {pipeline_mode = #tpu.pipeline_mode<synchronous>, transform_indices = @transform_5, window_bounds = array<i64: 32, 384>}, {pipeline_mode = #tpu.pipeline_mode<synchronous>, transform_indices = @transform_6, window_bounds = array<i64: 1, 384>}, {pipeline_mode = #tpu.pipeline_mode<synchronous>, transform_indices = @transform_7, window_bounds = array<i64: 16, 64>}, {pipeline_mode = #tpu.pipeline_mode<synchronous>, transform_indices = @transform_8, window_bounds = array<i64: 1, 64>}, {transform_indices = @transform_9, window_bounds = array<i64: 8, 64>}, {transform_indices = @transform_10, window_bounds = array<i64: 8, 128>}]} {
    %c0 = arith.constant 0 : index
    %c0_0 = arith.constant 0 : index
    %0 = vector.load %arg1[%c0, %c0_0] : memref<8x64xf32, #tpu.memory_space<vmem>>, vector<8x64xf32>
    %1 = arith.truncf %0 : vector<8x64xf32> to vector<8x64xbf16>
    %c0_1 = arith.constant 0 : index
    %c0_2 = arith.constant 0 : index
    %2 = vector.load %arg2[%c0_1, %c0_2] : memref<64x32xbf16, #tpu.memory_space<vmem>>, vector<64x32xbf16>
    %cst = arith.constant dense<0.000000e+00> : vector<8x32xf32>
    %3 = tpu.matmul %1, %2, %cst {dimension_numbers = #tpu.dot_dimension_numbers<[1], [0], [0], [1], [0, 0, 1, 1], [], []>} : vector<8x64xbf16>, vector<64x32xbf16>, vector<8x32xf32> -> vector<8x32xf32>
    %c0_3 = arith.constant 0 : index
    %c0_4 = arith.constant 0 : index
    %4 = vector.load %arg3[%c0_3, %c0_4] : memref<1x32xf32, #tpu.memory_space<vmem>>, vector<1x32xf32>
    %5 = vector.broadcast %4 : vector<1x32xf32> to vector<8x32xf32>
    %6 = arith.addf %3, %5 : vector<8x32xf32>
    %7 = math.tanh %6 : vector<8x32xf32>
    %8 = arith.truncf %7 : vector<8x32xf32> to vector<8x32xbf16>
    %c0_5 = arith.constant 0 : index
    %c0_6 = arith.constant 0 : index
    %9 = vector.load %arg4[%c0_5, %c0_6] : memref<32x32xbf16, #tpu.memory_space<vmem>>, vector<32x32xbf16>
    %cst_7 = arith.constant dense<0.000000e+00> : vector<8x32xf32>
    %10 = tpu.matmul %8, %9, %cst_7 {dimension_numbers = #tpu.dot_dimension_numbers<[1], [0], [0], [1], [0, 0, 1, 1], [], []>} : vector<8x32xbf16>, vector<32x32xbf16>, vector<8x32xf32> -> vector<8x32xf32>
    %c0_8 = arith.constant 0 : index
    %c0_9 = arith.constant 0 : index
    %11 = vector.load %arg5[%c0_8, %c0_9] : memref<1x32xf32, #tpu.memory_space<vmem>>, vector<1x32xf32>
    %12 = vector.broadcast %11 : vector<1x32xf32> to vector<8x32xf32>
    %13 = arith.addf %10, %12 : vector<8x32xf32>
    %14 = math.tanh %13 : vector<8x32xf32>
    %15 = arith.truncf %14 : vector<8x32xf32> to vector<8x32xbf16>
    %c0_10 = arith.constant 0 : index
    %c0_11 = arith.constant 0 : index
    %16 = vector.load %arg6[%c0_10, %c0_11] : memref<32x384xbf16, #tpu.memory_space<vmem>>, vector<32x384xbf16>
    %cst_12 = arith.constant dense<0.000000e+00> : vector<8x384xf32>
    %17 = tpu.matmul %15, %16, %cst_12 {dimension_numbers = #tpu.dot_dimension_numbers<[1], [0], [0], [1], [0, 0, 1, 1], [], []>} : vector<8x32xbf16>, vector<32x384xbf16>, vector<8x384xf32> -> vector<8x384xf32>
    %c0_13 = arith.constant 0 : index
    %c0_14 = arith.constant 0 : index
    %18 = vector.load %arg7[%c0_13, %c0_14] : memref<1x384xf32, #tpu.memory_space<vmem>>, vector<1x384xf32>
    %19 = vector.broadcast %18 : vector<1x384xf32> to vector<8x384xf32>
    %20 = arith.addf %17, %19 : vector<8x384xf32>
    %21 = vector.extract_strided_slice %20 {offsets = [0, 0], sizes = [8, 16], strides = [1, 1]} : vector<8x384xf32> to vector<8x16xf32>
    %22 = vector.extract_strided_slice %20 {offsets = [0, 128], sizes = [8, 16], strides = [1, 1]} : vector<8x384xf32> to vector<8x16xf32>
    %23 = vector.extract_strided_slice %20 {offsets = [0, 256], sizes = [8, 16], strides = [1, 1]} : vector<8x384xf32> to vector<8x16xf32>
    %24 = math.exp %22 : vector<8x16xf32>
    %25 = arith.mulf %23, %23 : vector<8x16xf32>
    %cst_15 = arith.constant dense<0.000000e+00> : vector<8xf32>
    %26 = vector.multi_reduction <add>, %25, %cst_15 [1] : vector<8x16xf32> to vector<8xf32>
    %27 = vector.shape_cast %26 : vector<8xf32> to vector<8x1xf32>
    %cst_16 = arith.constant 2.000000e+00 : f32
    %28 = vector.broadcast %cst_16 : f32 to vector<8x1xf32>
    %29 = arith.divf %28, %27 : vector<8x1xf32>
    %30 = arith.mulf %21, %21 : vector<8x16xf32>
    %cst_17 = arith.constant dense<0.000000e+00> : vector<8xf32>
    %31 = vector.multi_reduction <add>, %30, %cst_17 [1] : vector<8x16xf32> to vector<8xf32>
    %32 = vector.shape_cast %31 : vector<8xf32> to vector<8x1xf32>
    %cst_18 = arith.constant 2.000000e+00 : f32
    %33 = vector.broadcast %cst_18 : f32 to vector<8x1xf32>
    %34 = arith.divf %33, %32 : vector<8x1xf32>
    %35 = vector.broadcast %34 : vector<8x1xf32> to vector<8x16xf32>
    %36 = arith.mulf %35, %21 : vector<8x16xf32>
    %37 = arith.mulf %21, %21 : vector<8x16xf32>
    %cst_19 = arith.constant dense<0.000000e+00> : vector<8xf32>
    %38 = vector.multi_reduction <add>, %37, %cst_19 [1] : vector<8x16xf32> to vector<8xf32>
    %39 = vector.shape_cast %38 : vector<8xf32> to vector<8x1xf32>
    %40 = vector.broadcast %39 : vector<8x1xf32> to vector<8x16xf32>
    %41 = arith.mulf %36, %40 : vector<8x16xf32>
    %42 = arith.subf %21, %41 : vector<8x16xf32>
    %43 = arith.mulf %42, %42 : vector<8x16xf32>
    %cst_20 = arith.constant dense<0.000000e+00> : vector<8xf32>
    %44 = vector.multi_reduction <add>, %43, %cst_20 [1] : vector<8x16xf32> to vector<8xf32>
    %45 = vector.shape_cast %44 : vector<8xf32> to vector<8x1xf32>
    %cst_21 = arith.constant 2.000000e+00 : f32
    %46 = vector.broadcast %cst_21 : f32 to vector<8x1xf32>
    %47 = arith.divf %46, %45 : vector<8x1xf32>
    %48 = vector.broadcast %47 : vector<8x1xf32> to vector<8x16xf32>
    %49 = arith.mulf %48, %42 : vector<8x16xf32>
    %50 = arith.mulf %42, %42 : vector<8x16xf32>
    %cst_22 = arith.constant dense<0.000000e+00> : vector<8xf32>
    %51 = vector.multi_reduction <add>, %50, %cst_22 [1] : vector<8x16xf32> to vector<8xf32>
    %52 = vector.shape_cast %51 : vector<8xf32> to vector<8x1xf32>
    %53 = vector.broadcast %52 : vector<8x1xf32> to vector<8x16xf32>
    %54 = arith.mulf %49, %53 : vector<8x16xf32>
    %55 = arith.subf %42, %54 : vector<8x16xf32>
    %56 = arith.mulf %55, %55 : vector<8x16xf32>
    %cst_23 = arith.constant dense<0.000000e+00> : vector<8xf32>
    %57 = vector.multi_reduction <add>, %56, %cst_23 [1] : vector<8x16xf32> to vector<8xf32>
    %58 = vector.shape_cast %57 : vector<8xf32> to vector<8x1xf32>
    %cst_24 = arith.constant 2.000000e+00 : f32
    %59 = vector.broadcast %cst_24 : f32 to vector<8x1xf32>
    %60 = arith.divf %59, %58 : vector<8x1xf32>
    %61 = vector.broadcast %60 : vector<8x1xf32> to vector<8x16xf32>
    %62 = arith.mulf %61, %55 : vector<8x16xf32>
    %63 = arith.mulf %55, %21 : vector<8x16xf32>
    %cst_25 = arith.constant dense<0.000000e+00> : vector<8xf32>
    %64 = vector.multi_reduction <add>, %63, %cst_25 [1] : vector<8x16xf32> to vector<8xf32>
    %65 = vector.shape_cast %64 : vector<8xf32> to vector<8x1xf32>
    %66 = vector.broadcast %65 : vector<8x1xf32> to vector<8x16xf32>
    %67 = arith.mulf %62, %66 : vector<8x16xf32>
    %68 = arith.subf %21, %67 : vector<8x16xf32>
    %69 = vector.broadcast %47 : vector<8x1xf32> to vector<8x16xf32>
    %70 = arith.mulf %69, %42 : vector<8x16xf32>
    %71 = arith.mulf %42, %68 : vector<8x16xf32>
    %cst_26 = arith.constant dense<0.000000e+00> : vector<8xf32>
    %72 = vector.multi_reduction <add>, %71, %cst_26 [1] : vector<8x16xf32> to vector<8xf32>
    %73 = vector.shape_cast %72 : vector<8xf32> to vector<8x1xf32>
    %74 = vector.broadcast %73 : vector<8x1xf32> to vector<8x16xf32>
    %75 = arith.mulf %70, %74 : vector<8x16xf32>
    %76 = arith.subf %68, %75 : vector<8x16xf32>
    %77 = vector.broadcast %34 : vector<8x1xf32> to vector<8x16xf32>
    %78 = arith.mulf %77, %21 : vector<8x16xf32>
    %79 = arith.mulf %21, %76 : vector<8x16xf32>
    %cst_27 = arith.constant dense<0.000000e+00> : vector<8xf32>
    %80 = vector.multi_reduction <add>, %79, %cst_27 [1] : vector<8x16xf32> to vector<8xf32>
    %81 = vector.shape_cast %80 : vector<8xf32> to vector<8x1xf32>
    %82 = vector.broadcast %81 : vector<8x1xf32> to vector<8x16xf32>
    %83 = arith.mulf %78, %82 : vector<8x16xf32>
    %84 = arith.subf %76, %83 : vector<8x16xf32>
    %85 = vector.broadcast %29 : vector<8x1xf32> to vector<8x16xf32>
    %86 = arith.mulf %85, %23 : vector<8x16xf32>
    %87 = arith.mulf %23, %84 : vector<8x16xf32>
    %cst_28 = arith.constant dense<0.000000e+00> : vector<8xf32>
    %88 = vector.multi_reduction <add>, %87, %cst_28 [1] : vector<8x16xf32> to vector<8xf32>
    %89 = vector.shape_cast %88 : vector<8xf32> to vector<8x1xf32>
    %90 = vector.broadcast %89 : vector<8x1xf32> to vector<8x16xf32>
    %91 = arith.mulf %86, %90 : vector<8x16xf32>
    %92 = arith.subf %84, %91 : vector<8x16xf32>
    %93 = arith.mulf %23, %24 : vector<8x16xf32>
    %94 = arith.mulf %93, %23 : vector<8x16xf32>
    %cst_29 = arith.constant dense<0.000000e+00> : vector<8xf32>
    %95 = vector.multi_reduction <add>, %94, %cst_29 [1] : vector<8x16xf32> to vector<8xf32>
    %96 = vector.shape_cast %95 : vector<8xf32> to vector<8x1xf32>
    %97 = arith.mulf %23, %21 : vector<8x16xf32>
    %cst_30 = arith.constant dense<0.000000e+00> : vector<8xf32>
    %98 = vector.multi_reduction <add>, %97, %cst_30 [1] : vector<8x16xf32> to vector<8xf32>
    %99 = vector.shape_cast %98 : vector<8xf32> to vector<8x1xf32>
    %100 = arith.mulf %93, %21 : vector<8x16xf32>
    %cst_31 = arith.constant dense<0.000000e+00> : vector<8xf32>
    %101 = vector.multi_reduction <add>, %100, %cst_31 [1] : vector<8x16xf32> to vector<8xf32>
    %102 = vector.shape_cast %101 : vector<8xf32> to vector<8x1xf32>
    %103 = arith.mulf %23, %42 : vector<8x16xf32>
    %cst_32 = arith.constant dense<0.000000e+00> : vector<8xf32>
    %104 = vector.multi_reduction <add>, %103, %cst_32 [1] : vector<8x16xf32> to vector<8xf32>
    %105 = vector.shape_cast %104 : vector<8xf32> to vector<8x1xf32>
    %106 = arith.mulf %93, %42 : vector<8x16xf32>
    %cst_33 = arith.constant dense<0.000000e+00> : vector<8xf32>
    %107 = vector.multi_reduction <add>, %106, %cst_33 [1] : vector<8x16xf32> to vector<8xf32>
    %108 = vector.shape_cast %107 : vector<8xf32> to vector<8x1xf32>
    %109 = arith.mulf %23, %55 : vector<8x16xf32>
    %cst_34 = arith.constant dense<0.000000e+00> : vector<8xf32>
    %110 = vector.multi_reduction <add>, %109, %cst_34 [1] : vector<8x16xf32> to vector<8xf32>
    %111 = vector.shape_cast %110 : vector<8xf32> to vector<8x1xf32>
    %112 = arith.mulf %93, %55 : vector<8x16xf32>
    %cst_35 = arith.constant dense<0.000000e+00> : vector<8xf32>
    %113 = vector.multi_reduction <add>, %112, %cst_35 [1] : vector<8x16xf32> to vector<8xf32>
    %114 = vector.shape_cast %113 : vector<8xf32> to vector<8x1xf32>
    %115 = arith.mulf %21, %24 : vector<8x16xf32>
    %116 = arith.mulf %115, %21 : vector<8x16xf32>
    %cst_36 = arith.constant dense<0.000000e+00> : vector<8xf32>
    %117 = vector.multi_reduction <add>, %116, %cst_36 [1] : vector<8x16xf32> to vector<8xf32>
    %118 = vector.shape_cast %117 : vector<8xf32> to vector<8x1xf32>
    %119 = arith.mulf %21, %42 : vector<8x16xf32>
    %cst_37 = arith.constant dense<0.000000e+00> : vector<8xf32>
    %120 = vector.multi_reduction <add>, %119, %cst_37 [1] : vector<8x16xf32> to vector<8xf32>
    %121 = vector.shape_cast %120 : vector<8xf32> to vector<8x1xf32>
    %122 = arith.mulf %115, %42 : vector<8x16xf32>
    %cst_38 = arith.constant dense<0.000000e+00> : vector<8xf32>
    %123 = vector.multi_reduction <add>, %122, %cst_38 [1] : vector<8x16xf32> to vector<8xf32>
    %124 = vector.shape_cast %123 : vector<8xf32> to vector<8x1xf32>
    %125 = arith.mulf %21, %55 : vector<8x16xf32>
    %cst_39 = arith.constant dense<0.000000e+00> : vector<8xf32>
    %126 = vector.multi_reduction <add>, %125, %cst_39 [1] : vector<8x16xf32> to vector<8xf32>
    %127 = vector.shape_cast %126 : vector<8xf32> to vector<8x1xf32>
    %128 = arith.mulf %115, %55 : vector<8x16xf32>
    %cst_40 = arith.constant dense<0.000000e+00> : vector<8xf32>
    %129 = vector.multi_reduction <add>, %128, %cst_40 [1] : vector<8x16xf32> to vector<8xf32>
    %130 = vector.shape_cast %129 : vector<8xf32> to vector<8x1xf32>
    %131 = arith.mulf %42, %24 : vector<8x16xf32>
    %132 = arith.mulf %131, %42 : vector<8x16xf32>
    %cst_41 = arith.constant dense<0.000000e+00> : vector<8xf32>
    %133 = vector.multi_reduction <add>, %132, %cst_41 [1] : vector<8x16xf32> to vector<8xf32>
    %134 = vector.shape_cast %133 : vector<8xf32> to vector<8x1xf32>
    %135 = arith.mulf %42, %55 : vector<8x16xf32>
    %cst_42 = arith.constant dense<0.000000e+00> : vector<8xf32>
    %136 = vector.multi_reduction <add>, %135, %cst_42 [1] : vector<8x16xf32> to vector<8xf32>
    %137 = vector.shape_cast %136 : vector<8xf32> to vector<8x1xf32>
    %138 = arith.mulf %131, %55 : vector<8x16xf32>
    %cst_43 = arith.constant dense<0.000000e+00> : vector<8xf32>
    %139 = vector.multi_reduction <add>, %138, %cst_43 [1] : vector<8x16xf32> to vector<8xf32>
    %140 = vector.shape_cast %139 : vector<8xf32> to vector<8x1xf32>
    %141 = arith.mulf %55, %24 : vector<8x16xf32>
    %142 = arith.mulf %141, %55 : vector<8x16xf32>
    %cst_44 = arith.constant dense<0.000000e+00> : vector<8xf32>
    %143 = vector.multi_reduction <add>, %142, %cst_44 [1] : vector<8x16xf32> to vector<8xf32>
    %144 = vector.shape_cast %143 : vector<8xf32> to vector<8x1xf32>
    %145 = arith.mulf %29, %99 : vector<8x1xf32>
    %cst_45 = arith.constant 0.000000e+00 : f32
    %146 = vector.broadcast %cst_45 : f32 to vector<8x1xf32>
    %147 = arith.subf %146, %34 : vector<8x1xf32>
    %148 = arith.mulf %147, %145 : vector<8x1xf32>
    %149 = arith.mulf %29, %105 : vector<8x1xf32>
    %150 = arith.mulf %148, %121 : vector<8x1xf32>
    %151 = arith.addf %149, %150 : vector<8x1xf32>
    %cst_46 = arith.constant 0.000000e+00 : f32
    %152 = vector.broadcast %cst_46 : f32 to vector<8x1xf32>
    %153 = arith.subf %152, %47 : vector<8x1xf32>
    %154 = arith.mulf %153, %151 : vector<8x1xf32>
    %155 = arith.mulf %34, %121 : vector<8x1xf32>
    %cst_47 = arith.constant 0.000000e+00 : f32
    %156 = vector.broadcast %cst_47 : f32 to vector<8x1xf32>
    %157 = arith.subf %156, %47 : vector<8x1xf32>
    %158 = arith.mulf %157, %155 : vector<8x1xf32>
    %159 = arith.mulf %29, %111 : vector<8x1xf32>
    %160 = arith.mulf %148, %127 : vector<8x1xf32>
    %161 = arith.addf %159, %160 : vector<8x1xf32>
    %162 = arith.mulf %154, %137 : vector<8x1xf32>
    %163 = arith.addf %161, %162 : vector<8x1xf32>
    %cst_48 = arith.constant 0.000000e+00 : f32
    %164 = vector.broadcast %cst_48 : f32 to vector<8x1xf32>
    %165 = arith.subf %164, %60 : vector<8x1xf32>
    %166 = arith.mulf %165, %163 : vector<8x1xf32>
    %167 = arith.mulf %34, %127 : vector<8x1xf32>
    %168 = arith.mulf %158, %137 : vector<8x1xf32>
    %169 = arith.addf %167, %168 : vector<8x1xf32>
    %cst_49 = arith.constant 0.000000e+00 : f32
    %170 = vector.broadcast %cst_49 : f32 to vector<8x1xf32>
    %171 = arith.subf %170, %60 : vector<8x1xf32>
    %172 = arith.mulf %171, %169 : vector<8x1xf32>
    %173 = arith.mulf %47, %137 : vector<8x1xf32>
    %cst_50 = arith.constant 0.000000e+00 : f32
    %174 = vector.broadcast %cst_50 : f32 to vector<8x1xf32>
    %175 = arith.subf %174, %60 : vector<8x1xf32>
    %176 = arith.mulf %175, %173 : vector<8x1xf32>
    %cst_51 = arith.constant dense<0.000000e+00> : vector<8xf32>
    %177 = vector.multi_reduction <add>, %24, %cst_51 [1] : vector<8x16xf32> to vector<8xf32>
    %178 = vector.shape_cast %177 : vector<8xf32> to vector<8x1xf32>
    %179 = arith.mulf %29, %96 : vector<8x1xf32>
    %180 = arith.mulf %148, %102 : vector<8x1xf32>
    %181 = arith.addf %179, %180 : vector<8x1xf32>
    %182 = arith.mulf %154, %108 : vector<8x1xf32>
    %183 = arith.addf %181, %182 : vector<8x1xf32>
    %184 = arith.mulf %166, %114 : vector<8x1xf32>
    %185 = arith.addf %183, %184 : vector<8x1xf32>
    %186 = arith.mulf %34, %118 : vector<8x1xf32>
    %187 = arith.addf %185, %186 : vector<8x1xf32>
    %188 = arith.mulf %158, %124 : vector<8x1xf32>
    %189 = arith.addf %187, %188 : vector<8x1xf32>
    %190 = arith.mulf %172, %130 : vector<8x1xf32>
    %191 = arith.addf %189, %190 : vector<8x1xf32>
    %192 = arith.mulf %47, %134 : vector<8x1xf32>
    %193 = arith.addf %191, %192 : vector<8x1xf32>
    %194 = arith.mulf %176, %140 : vector<8x1xf32>
    %195 = arith.addf %193, %194 : vector<8x1xf32>
    %196 = arith.mulf %60, %144 : vector<8x1xf32>
    %197 = arith.addf %195, %196 : vector<8x1xf32>
    %198 = arith.mulf %29, %27 : vector<8x1xf32>
    %199 = arith.mulf %148, %99 : vector<8x1xf32>
    %200 = arith.addf %198, %199 : vector<8x1xf32>
    %201 = arith.mulf %154, %105 : vector<8x1xf32>
    %202 = arith.addf %200, %201 : vector<8x1xf32>
    %203 = arith.mulf %166, %111 : vector<8x1xf32>
    %204 = arith.addf %202, %203 : vector<8x1xf32>
    %205 = arith.mulf %29, %99 : vector<8x1xf32>
    %206 = arith.mulf %148, %32 : vector<8x1xf32>
    %207 = arith.addf %205, %206 : vector<8x1xf32>
    %208 = arith.mulf %154, %121 : vector<8x1xf32>
    %209 = arith.addf %207, %208 : vector<8x1xf32>
    %210 = arith.mulf %166, %127 : vector<8x1xf32>
    %211 = arith.addf %209, %210 : vector<8x1xf32>
    %212 = arith.mulf %29, %105 : vector<8x1xf32>
    %213 = arith.mulf %148, %121 : vector<8x1xf32>
    %214 = arith.addf %212, %213 : vector<8x1xf32>
    %215 = arith.mulf %154, %45 : vector<8x1xf32>
    %216 = arith.addf %214, %215 : vector<8x1xf32>
    %217 = arith.mulf %166, %137 : vector<8x1xf32>
    %218 = arith.addf %216, %217 : vector<8x1xf32>
    %219 = arith.mulf %29, %111 : vector<8x1xf32>
    %220 = arith.mulf %148, %127 : vector<8x1xf32>
    %221 = arith.addf %219, %220 : vector<8x1xf32>
    %222 = arith.mulf %154, %137 : vector<8x1xf32>
    %223 = arith.addf %221, %222 : vector<8x1xf32>
    %224 = arith.mulf %166, %58 : vector<8x1xf32>
    %225 = arith.addf %223, %224 : vector<8x1xf32>
    %226 = arith.mulf %34, %99 : vector<8x1xf32>
    %227 = arith.mulf %158, %105 : vector<8x1xf32>
    %228 = arith.addf %226, %227 : vector<8x1xf32>
    %229 = arith.mulf %172, %111 : vector<8x1xf32>
    %230 = arith.addf %228, %229 : vector<8x1xf32>
    %231 = arith.mulf %34, %32 : vector<8x1xf32>
    %232 = arith.mulf %158, %121 : vector<8x1xf32>
    %233 = arith.addf %231, %232 : vector<8x1xf32>
    %234 = arith.mulf %172, %127 : vector<8x1xf32>
    %235 = arith.addf %233, %234 : vector<8x1xf32>
    %236 = arith.mulf %34, %121 : vector<8x1xf32>
    %237 = arith.mulf %158, %45 : vector<8x1xf32>
    %238 = arith.addf %236, %237 : vector<8x1xf32>
    %239 = arith.mulf %172, %137 : vector<8x1xf32>
    %240 = arith.addf %238, %239 : vector<8x1xf32>
    %241 = arith.mulf %34, %127 : vector<8x1xf32>
    %242 = arith.mulf %158, %137 : vector<8x1xf32>
    %243 = arith.addf %241, %242 : vector<8x1xf32>
    %244 = arith.mulf %172, %58 : vector<8x1xf32>
    %245 = arith.addf %243, %244 : vector<8x1xf32>
    %246 = arith.mulf %47, %105 : vector<8x1xf32>
    %247 = arith.mulf %176, %111 : vector<8x1xf32>
    %248 = arith.addf %246, %247 : vector<8x1xf32>
    %249 = arith.mulf %47, %121 : vector<8x1xf32>
    %250 = arith.mulf %176, %127 : vector<8x1xf32>
    %251 = arith.addf %249, %250 : vector<8x1xf32>
    %252 = arith.mulf %47, %45 : vector<8x1xf32>
    %253 = arith.mulf %176, %137 : vector<8x1xf32>
    %254 = arith.addf %252, %253 : vector<8x1xf32>
    %255 = arith.mulf %47, %137 : vector<8x1xf32>
    %256 = arith.mulf %176, %58 : vector<8x1xf32>
    %257 = arith.addf %255, %256 : vector<8x1xf32>
    %258 = arith.mulf %60, %111 : vector<8x1xf32>
    %259 = arith.mulf %60, %127 : vector<8x1xf32>
    %260 = arith.mulf %60, %137 : vector<8x1xf32>
    %261 = arith.mulf %60, %58 : vector<8x1xf32>
    %262 = arith.mulf %204, %29 : vector<8x1xf32>
    %263 = arith.mulf %262, %96 : vector<8x1xf32>
    %264 = arith.mulf %204, %148 : vector<8x1xf32>
    %265 = arith.mulf %211, %34 : vector<8x1xf32>
    %266 = arith.addf %264, %265 : vector<8x1xf32>
    %267 = arith.mulf %266, %102 : vector<8x1xf32>
    %268 = arith.addf %263, %267 : vector<8x1xf32>
    %269 = arith.mulf %204, %154 : vector<8x1xf32>
    %270 = arith.mulf %211, %158 : vector<8x1xf32>
    %271 = arith.addf %269, %270 : vector<8x1xf32>
    %272 = arith.mulf %218, %47 : vector<8x1xf32>
    %273 = arith.addf %271, %272 : vector<8x1xf32>
    %274 = arith.mulf %273, %108 : vector<8x1xf32>
    %275 = arith.addf %268, %274 : vector<8x1xf32>
    %276 = arith.mulf %204, %166 : vector<8x1xf32>
    %277 = arith.mulf %211, %172 : vector<8x1xf32>
    %278 = arith.addf %276, %277 : vector<8x1xf32>
    %279 = arith.mulf %218, %176 : vector<8x1xf32>
    %280 = arith.addf %278, %279 : vector<8x1xf32>
    %281 = arith.mulf %225, %60 : vector<8x1xf32>
    %282 = arith.addf %280, %281 : vector<8x1xf32>
    %283 = arith.mulf %282, %114 : vector<8x1xf32>
    %284 = arith.addf %275, %283 : vector<8x1xf32>
    %285 = arith.mulf %230, %29 : vector<8x1xf32>
    %286 = arith.mulf %285, %102 : vector<8x1xf32>
    %287 = arith.addf %284, %286 : vector<8x1xf32>
    %288 = arith.mulf %230, %148 : vector<8x1xf32>
    %289 = arith.mulf %235, %34 : vector<8x1xf32>
    %290 = arith.addf %288, %289 : vector<8x1xf32>
    %291 = arith.mulf %290, %118 : vector<8x1xf32>
    %292 = arith.addf %287, %291 : vector<8x1xf32>
    %293 = arith.mulf %230, %154 : vector<8x1xf32>
    %294 = arith.mulf %235, %158 : vector<8x1xf32>
    %295 = arith.addf %293, %294 : vector<8x1xf32>
    %296 = arith.mulf %240, %47 : vector<8x1xf32>
    %297 = arith.addf %295, %296 : vector<8x1xf32>
    %298 = arith.mulf %297, %124 : vector<8x1xf32>
    %299 = arith.addf %292, %298 : vector<8x1xf32>
    %300 = arith.mulf %230, %166 : vector<8x1xf32>
    %301 = arith.mulf %235, %172 : vector<8x1xf32>
    %302 = arith.addf %300, %301 : vector<8x1xf32>
    %303 = arith.mulf %240, %176 : vector<8x1xf32>
    %304 = arith.addf %302, %303 : vector<8x1xf32>
    %305 = arith.mulf %245, %60 : vector<8x1xf32>
    %306 = arith.addf %304, %305 : vector<8x1xf32>
    %307 = arith.mulf %306, %130 : vector<8x1xf32>
    %308 = arith.addf %299, %307 : vector<8x1xf32>
    %309 = arith.mulf %248, %29 : vector<8x1xf32>
    %310 = arith.mulf %309, %108 : vector<8x1xf32>
    %311 = arith.addf %308, %310 : vector<8x1xf32>
    %312 = arith.mulf %248, %148 : vector<8x1xf32>
    %313 = arith.mulf %251, %34 : vector<8x1xf32>
    %314 = arith.addf %312, %313 : vector<8x1xf32>
    %315 = arith.mulf %314, %124 : vector<8x1xf32>
    %316 = arith.addf %311, %315 : vector<8x1xf32>
    %317 = arith.mulf %248, %154 : vector<8x1xf32>
    %318 = arith.mulf %251, %158 : vector<8x1xf32>
    %319 = arith.addf %317, %318 : vector<8x1xf32>
    %320 = arith.mulf %254, %47 : vector<8x1xf32>
    %321 = arith.addf %319, %320 : vector<8x1xf32>
    %322 = arith.mulf %321, %134 : vector<8x1xf32>
    %323 = arith.addf %316, %322 : vector<8x1xf32>
    %324 = arith.mulf %248, %166 : vector<8x1xf32>
    %325 = arith.mulf %251, %172 : vector<8x1xf32>
    %326 = arith.addf %324, %325 : vector<8x1xf32>
    %327 = arith.mulf %254, %176 : vector<8x1xf32>
    %328 = arith.addf %326, %327 : vector<8x1xf32>
    %329 = arith.mulf %257, %60 : vector<8x1xf32>
    %330 = arith.addf %328, %329 : vector<8x1xf32>
    %331 = arith.mulf %330, %140 : vector<8x1xf32>
    %332 = arith.addf %323, %331 : vector<8x1xf32>
    %333 = arith.mulf %258, %29 : vector<8x1xf32>
    %334 = arith.mulf %333, %114 : vector<8x1xf32>
    %335 = arith.addf %332, %334 : vector<8x1xf32>
    %336 = arith.mulf %258, %148 : vector<8x1xf32>
    %337 = arith.mulf %259, %34 : vector<8x1xf32>
    %338 = arith.addf %336, %337 : vector<8x1xf32>
    %339 = arith.mulf %338, %130 : vector<8x1xf32>
    %340 = arith.addf %335, %339 : vector<8x1xf32>
    %341 = arith.mulf %258, %154 : vector<8x1xf32>
    %342 = arith.mulf %259, %158 : vector<8x1xf32>
    %343 = arith.addf %341, %342 : vector<8x1xf32>
    %344 = arith.mulf %260, %47 : vector<8x1xf32>
    %345 = arith.addf %343, %344 : vector<8x1xf32>
    %346 = arith.mulf %345, %140 : vector<8x1xf32>
    %347 = arith.addf %340, %346 : vector<8x1xf32>
    %348 = arith.mulf %258, %166 : vector<8x1xf32>
    %349 = arith.mulf %259, %172 : vector<8x1xf32>
    %350 = arith.addf %348, %349 : vector<8x1xf32>
    %351 = arith.mulf %260, %176 : vector<8x1xf32>
    %352 = arith.addf %350, %351 : vector<8x1xf32>
    %353 = arith.mulf %261, %60 : vector<8x1xf32>
    %354 = arith.addf %352, %353 : vector<8x1xf32>
    %355 = arith.mulf %354, %144 : vector<8x1xf32>
    %356 = arith.addf %347, %355 : vector<8x1xf32>
    %cst_52 = arith.constant 2.000000e+00 : f32
    %357 = vector.broadcast %cst_52 : f32 to vector<8x1xf32>
    %358 = arith.mulf %357, %197 : vector<8x1xf32>
    %359 = arith.subf %178, %358 : vector<8x1xf32>
    %360 = arith.addf %359, %356 : vector<8x1xf32>
    %361 = arith.truncf %92 : vector<8x16xf32> to vector<8x16xbf16>
    %c0_53 = arith.constant 0 : index
    %c0_54 = arith.constant 0 : index
    %362 = vector.load %arg8[%c0_53, %c0_54] : memref<16x64xbf16, #tpu.memory_space<vmem>>, vector<16x64xbf16>
    %cst_55 = arith.constant dense<0.000000e+00> : vector<8x64xf32>
    %363 = tpu.matmul %361, %362, %cst_55 {dimension_numbers = #tpu.dot_dimension_numbers<[1], [0], [0], [1], [0, 0, 1, 1], [], []>} : vector<8x16xbf16>, vector<16x64xbf16>, vector<8x64xf32> -> vector<8x64xf32>
    %c0_56 = arith.constant 0 : index
    %c0_57 = arith.constant 0 : index
    %364 = vector.load %arg9[%c0_56, %c0_57] : memref<1x64xf32, #tpu.memory_space<vmem>>, vector<1x64xf32>
    %365 = vector.broadcast %364 : vector<1x64xf32> to vector<8x64xf32>
    %366 = arith.addf %363, %365 : vector<8x64xf32>
    %cst_58 = arith.constant dense<0xFF800000> : vector<8xf32>
    %367 = vector.multi_reduction <maximumf>, %366, %cst_58 [1] : vector<8x64xf32> to vector<8xf32>
    %368 = vector.shape_cast %367 : vector<8xf32> to vector<8x1xf32>
    %369 = vector.broadcast %368 : vector<8x1xf32> to vector<8x64xf32>
    %370 = arith.subf %366, %369 : vector<8x64xf32>
    %371 = math.exp %370 : vector<8x64xf32>
    %cst_59 = arith.constant dense<0.000000e+00> : vector<8xf32>
    %372 = vector.multi_reduction <add>, %371, %cst_59 [1] : vector<8x64xf32> to vector<8xf32>
    %373 = vector.shape_cast %372 : vector<8xf32> to vector<8x1xf32>
    %374 = tpu.reciprocal %373 {approx = true} : vector<8x1xf32> -> vector<8x1xf32>
    %375 = vector.broadcast %374 : vector<8x1xf32> to vector<8x64xf32>
    %376 = arith.mulf %371, %375 : vector<8x64xf32>
    %cst_60 = arith.constant 1.000000e-10 : f32
    %377 = vector.broadcast %cst_60 : f32 to vector<8x64xf32>
    %378 = arith.addf %376, %377 : vector<8x64xf32>
    %379 = math.log %378 : vector<8x64xf32>
    %380 = arith.mulf %0, %379 : vector<8x64xf32>
    %cst_61 = arith.constant dense<0.000000e+00> : vector<8xf32>
    %381 = vector.multi_reduction <add>, %380, %cst_61 [1] : vector<8x64xf32> to vector<8xf32>
    %382 = vector.shape_cast %381 : vector<8xf32> to vector<8x1xf32>
    %cst_62 = arith.constant 0.000000e+00 : f32
    %383 = vector.broadcast %cst_62 : f32 to vector<8x1xf32>
    %384 = arith.subf %383, %382 : vector<8x1xf32>
    %385 = arith.mulf %92, %92 : vector<8x16xf32>
    %cst_63 = arith.constant dense<0.000000e+00> : vector<8xf32>
    %386 = vector.multi_reduction <add>, %385, %cst_63 [1] : vector<8x16xf32> to vector<8xf32>
    %387 = vector.shape_cast %386 : vector<8xf32> to vector<8x1xf32>
    %cst_64 = arith.constant dense<0.000000e+00> : vector<8xf32>
    %388 = vector.multi_reduction <add>, %22, %cst_64 [1] : vector<8x16xf32> to vector<8xf32>
    %389 = vector.shape_cast %388 : vector<8xf32> to vector<8x1xf32>
    %cst_65 = arith.constant 0.000000e+00 : f32
    %390 = vector.broadcast %cst_65 : f32 to vector<8x1xf32>
    %391 = arith.subf %390, %389 : vector<8x1xf32>
    %392 = arith.addf %360, %387 : vector<8x1xf32>
    %393 = arith.addf %392, %391 : vector<8x1xf32>
    %cst_66 = arith.constant 1.600000e+01 : f32
    %394 = vector.broadcast %cst_66 : f32 to vector<8x1xf32>
    %395 = arith.subf %393, %394 : vector<8x1xf32>
    %cst_67 = arith.constant 5.000000e-01 : f32
    %396 = vector.broadcast %cst_67 : f32 to vector<8x1xf32>
    %397 = arith.mulf %396, %395 : vector<8x1xf32>
    %c0_68 = arith.constant 0 : index
    %c0_69 = arith.constant 0 : index
    %398 = vector.load %arg10[%c0_68, %c0_69] : memref<8x64xf32, #tpu.memory_space<vmem>>, vector<8x64xf32>
    tpu.vector_store %arg10[%c0_68, %c0_69], %376 {strides = array<i32>} : memref<8x64xf32, #tpu.memory_space<vmem>>, vector<8x64xf32>,
    %cst_70 = arith.constant 0.000000e+00 : f32
    %399 = vector.broadcast %cst_70 : f32 to vector<8x128xf32>
    %c0_71 = arith.constant 0 : index
    %c0_72 = arith.constant 0 : index
    %400 = vector.load %arg11[%c0_71, %c0_72] : memref<8x128xf32, #tpu.memory_space<vmem>>, vector<8x128xf32>
    tpu.vector_store %arg11[%c0_71, %c0_72], %399 {strides = array<i32>} : memref<8x128xf32, #tpu.memory_space<vmem>>, vector<8x128xf32>,
    %c0_73 = arith.constant 0 : index
    %c0_74 = arith.constant 0 : index
    %401 = vector.load %arg11[%c0_73, %c0_74] : memref<8x128xf32, #tpu.memory_space<vmem>>, vector<8x16xf32>
    tpu.vector_store %arg11[%c0_73, %c0_74], %21 {strides = array<i32>} : memref<8x128xf32, #tpu.memory_space<vmem>>, vector<8x16xf32>,
    %c0_75 = arith.constant 0 : index
    %c16 = arith.constant 16 : index
    %402 = vector.load %arg11[%c0_75, %c16] : memref<8x128xf32, #tpu.memory_space<vmem>>, vector<8x16xf32>
    tpu.vector_store %arg11[%c0_75, %c16], %92 {strides = array<i32>} : memref<8x128xf32, #tpu.memory_space<vmem>>, vector<8x16xf32>,
    %c0_76 = arith.constant 0 : index
    %c32 = arith.constant 32 : index
    %403 = vector.load %arg11[%c0_76, %c32] : memref<8x128xf32, #tpu.memory_space<vmem>>, vector<8x1xf32>
    tpu.vector_store %arg11[%c0_76, %c32], %384 {strides = array<i32>} : memref<8x128xf32, #tpu.memory_space<vmem>>, vector<8x1xf32>,
    %c0_77 = arith.constant 0 : index
    %c33 = arith.constant 33 : index
    %404 = vector.load %arg11[%c0_77, %c33] : memref<8x128xf32, #tpu.memory_space<vmem>>, vector<8x1xf32>
    tpu.vector_store %arg11[%c0_77, %c33], %397 {strides = array<i32>} : memref<8x128xf32, #tpu.memory_space<vmem>>, vector<8x1xf32>,
    return
  }
  func.func @transform_0(%arg0: i32) -> (i32, i32) {
    %c0_i32 = arith.constant 0 : i32
    %c0_i32_0 = arith.constant 0 : i32
    return %arg0, %c0_i32 : i32, i32
  }
  func.func @transform_1(%arg0: i32) -> (i32, i32) {
    %c0_i32 = arith.constant 0 : i32
    %c0_i32_0 = arith.constant 0 : i32
    %c0_i32_1 = arith.constant 0 : i32
    return %c0_i32, %c0_i32_0 : i32, i32
  }
  func.func @transform_2(%arg0: i32) -> (i32, i32) {
    %c0_i32 = arith.constant 0 : i32
    %c0_i32_0 = arith.constant 0 : i32
    %c0_i32_1 = arith.constant 0 : i32
    return %c0_i32, %c0_i32_0 : i32, i32
  }
  func.func @transform_3(%arg0: i32) -> (i32, i32) {
    %c0_i32 = arith.constant 0 : i32
    %c0_i32_0 = arith.constant 0 : i32
    %c0_i32_1 = arith.constant 0 : i32
    return %c0_i32, %c0_i32_0 : i32, i32
  }
  func.func @transform_4(%arg0: i32) -> (i32, i32) {
    %c0_i32 = arith.constant 0 : i32
    %c0_i32_0 = arith.constant 0 : i32
    %c0_i32_1 = arith.constant 0 : i32
    return %c0_i32, %c0_i32_0 : i32, i32
  }
  func.func @transform_5(%arg0: i32) -> (i32, i32) {
    %c0_i32 = arith.constant 0 : i32
    %c0_i32_0 = arith.constant 0 : i32
    %c0_i32_1 = arith.constant 0 : i32
    return %c0_i32, %c0_i32_0 : i32, i32
  }
  func.func @transform_6(%arg0: i32) -> (i32, i32) {
    %c0_i32 = arith.constant 0 : i32
    %c0_i32_0 = arith.constant 0 : i32
    %c0_i32_1 = arith.constant 0 : i32
    return %c0_i32, %c0_i32_0 : i32, i32
  }
  func.func @transform_7(%arg0: i32) -> (i32, i32) {
    %c0_i32 = arith.constant 0 : i32
    %c0_i32_0 = arith.constant 0 : i32
    %c0_i32_1 = arith.constant 0 : i32
    return %c0_i32, %c0_i32_0 : i32, i32
  }
  func.func @transform_8(%arg0: i32) -> (i32, i32) {
    %c0_i32 = arith.constant 0 : i32
    %c0_i32_0 = arith.constant 0 : i32
    %c0_i32_1 = arith.constant 0 : i32
    return %c0_i32, %c0_i32_0 : i32, i32
  }
  func.func @transform_9(%arg0: i32) -> (i32, i32) {
    %c0_i32 = arith.constant 0 : i32
    %c0_i32_0 = arith.constant 0 : i32
    return %arg0, %c0_i32 : i32, i32
  }
  func.func @transform_10(%arg0: i32) -> (i32, i32) {
    %c0_i32 = arith.constant 0 : i32
    %c0_i32_0 = arith.constant 0 : i32
    return %arg0, %c0_i32 : i32, i32
  }
}

</mosaic_0001>

<bundles_post_ra>
// kernel: tpu_custom_call.1
= control target key start
LH: loop header
LB: loop body
LE: loop exit
PB: predicated region body
PF: predicated region fallthrough
CT: control target
= control target key end

     0   :  { %16 = vsyncpa [#allocation3], 0  ;;  %s1580_s0 = inlined_call_operand.hbm [shape: f32[8,64], index: 0, kind: input, shape index: {}]   ;;  %s1581_s1 = inlined_call_operand.vmem [shape: bf16[64,32], index: 1, kind: input, shape index: {}]   ;;  %s1582_s2 = inlined_call_operand.vmem [shape: f32[1,32], index: 2, kind: input, shape index: {}]   ;;  %s1583_s3 = inlined_call_operand.vmem [shape: bf16[32,32], index: 3, kind: input, shape index: {}]   ;;  %s1584_s4 = inlined_call_operand.vmem [shape: f32[1,32], index: 4, kind: input, shape index: {}]   ;;  %s1585_s5 = inlined_call_operand.vmem [shape: bf16[32,384], index: 5, kind: input, shape index: {}]   ;;  %s1586_s6 = inlined_call_operand.hbm [shape: f32[1,384], index: 6, kind: input, shape index: {}]   ;;  %s1587_s7 = inlined_call_operand.vmem [shape: bf16[16,64], index: 7, kind: input, shape index: {}]   ;;  %s1588_s8 = inlined_call_operand.vmem [shape: f32[1,64], index: 8, kind: input, shape index: {}]   ;;  %s1589_s9 = inlined_call_operand.hbm [shape: f32[8,64], index: 9, kind: output, shape index: {0}]   ;;  %s1590_s10 = inlined_call_operand.hbm [shape: f32[8,128], index: 10, kind: output, shape index: {1}]  }
   0x1   :  { %17 = vsyncpa [#allocation6], 0 }
   0x2   :  { %18 = vsyncpa [#allocation4], 0 }
   0x3   :  { %19 = vsyncpa [#allocation9], 0  ;;  %s1015_s13 = smov [#allocation2]   ;;  %s1016_s15 = smov [#allocation5]  }
   0x4   :  { %s26_s14 = sshll.u32 %s1015_s13, 4  ;;  %s46_s16 = sshll.u32 %s1016_s15, 4  ;;  %s27_s14 = int_to_ptr.vmem [resolvable:$true] %s26_s14  ;;  %s47_s16 = int_to_ptr.vmem [resolvable:$true] %s46_s16 }
   0x5   :  { %s919_s19 = scalar_lea.hbm %s1580_s0, 128 }
   0x6   :  { %p920_p0 = scmp.ne.s32.totalorder %s1580_s0, %s919_s19  ;;  %p923_p1 = scmp.lt.u32.totalorder %s919_s19, %s1580_s0 }
   0x8   :  { %p925_p2 = pnand %p923_p1, %p920_p0 }
   0xa   :  { %928 = shalt.err (!%p925_p2)
}
   0xb   :  { %s929_s24 = scalar_lea.vmem %s27_s14, 128  ;;  %p934_p4 = scmp.lt.s32.totalorder %s27_s14, %s27_s14 }
   0xc   :  { %p930_p3 = scmp.ne.s32.totalorder %s27_s14, %s929_s24  ;;  %p935_p5 = scmp.lt.s32.totalorder %s929_s24, %s929_s24 }
   0xe   :  { %p936_p6 = por %p935_p5, %p934_p4 }
  0x10   :  { %p937_p7 = pnand %p936_p6, %p930_p3 }
  0x12   :  { %940 = shalt.err (!%p937_p7)
}
  0x13   :  { %29 = dma.hbm_to_vmem [thread:$0]  %s1580_s0, 128, %s27_s14, [#allocation3]  }
  0x14   :  { %s941_s29 = scalar_lea.hbm %s1586_s6, 48 }
  0x15   :  { %p942_p8 = scmp.ne.s32.totalorder %s1586_s6, %s941_s29  ;;  %p945_p9 = scmp.lt.u32.totalorder %s941_s29, %s1586_s6 }
  0x17   :  { %p947_p10 = pnand %p945_p9, %p942_p8 }
  0x19   :  { %950 = shalt.err (!%p947_p10)
}
  0x1a   :  { %s951_s15 = scalar_lea.vmem %s47_s16, 48  ;;  %s955_s17 = scalar_lea.vmem %s47_s16, 64 }
  0x1b   :  { %p952_p11 = scmp.ne.s32.totalorder %s47_s16, %s951_s15  ;;  %p956_p12 = scmp.lt.s32.totalorder %s47_s16, %s47_s16 }
  0x1c   :  { %p957_p13 = scmp.lt.s32.totalorder %s955_s17, %s951_s15 }
  0x1e   :  { %p958_p0 = por %p957_p13, %p956_p12 }
  0x20   :  { %p959_p1 = pnand %p958_p0, %p952_p11 }
  0x22   :  { %962 = shalt.err (!%p959_p1)
}
  0x23   :  { %49 = dma.hbm_to_vmem [thread:$0]  %s1586_s6, 48, %s47_s16, [#allocation6]  }
  0x24   :  { %1007 = dma.done.wait [#allocation3], 128  }
  0x25   :  { %1008 = vsyncadd [#allocation3], 4294967168 }
  0x26   :  { %1009 = dma.done.wait [#allocation6], 48  }
  0x27   :  { %1010 = vsyncadd [#allocation6], 4294967248  ;;  %v1017_v0 = vmov 0.0   ;;  %vm1018_vm0 = vmmov 0   ;;  %v884_v1 = vld [vmem:[%s1581_s1] sm:$0xff]   ;;  %v885_v2 = vld [vmem:[%s1581_s1 + $0x8] sm:$0xff]   ;;  %v227_v32 = vlaneseq }
  0x28   :  { %842 = vmatprep.subr.bf16.mxu0 %v1017_v0  ;;  %765 = vst [vmem:[#allocation8] sm:$0xff] %v1017_v0  ;;  %850 = vmatprep.mubr.msk.bf16.mxu0 %vm1018_vm0, %v1017_v0  ;;  %v886_v3 = vld [vmem:[%s1581_s1 + $0x10] sm:$0xff]   ;;  %v887_v4 = vld [vmem:[%s1581_s1 + $0x18] sm:$0xff]   ;;  %v1123_v5 = vld [vmem:[#allocation2] sm:$0xff]  ;;  %vm102_vm1 = vcmask 523264   ;;  %vm171_vm2 = vcmask 261120  }
  0x29   :  { %854 = vmatprep.subr.bf16.mxu1 %v1017_v0  ;;  %858 = vmatprep.mubr.msk.bf16.mxu1 %vm1018_vm0, %v1017_v0  ;;  %1595 = vst [vmem:[#allocation14_spill] sm:$0xff] %v1123_v5  ;;  %v62_v6 = vpack.c.bf16 %v1123_v5, %v1123_v5  ;;  %v888_v7 = vld [vmem:[%s1583_s3] sm:$0xff]   ;;  %v889_v8 = vld [vmem:[%s1583_s3 + $0x8] sm:$0xff]   ;;  %v1019_v23 = vmov 0   ;;  %v1170_v33 = vshrl.u32 %v227_v32, 7  ;;  %vm361_vm3 = vcmask 130048  }
  0x2a   :  { %843 = vmatpush3.bf16.msra.mxu0 %v884_v1  ;;  %855 = vmatpush3.bf16.msra.mxu1 %v888_v7  ;;  %v807_v9 = vld [vmem:[%s1582_s2] ss:$0 sm:$0xff]  ;;  %v892_v17 = vld [vmem:[%s1585_s5 + $0x4] ss:$12 sps:$4 sm:$0xff]   ;;  %v893_v19 = vld [vmem:[%s1585_s5 + $0x8] ss:$12 sps:$4 sm:$0xff]  }
  0x2b   :  { %844 = vmatprep.subr.bf16.mxu0 %v1017_v0  ;;  %856 = vmatprep.subr.bf16.mxu1 %v1017_v0  ;;  %v890_v18 = vld [vmem:[%s1585_s5] ss:$12 sps:$4 sm:$0xff]   ;;  %v896_v20 = vld [vmem:[%s1585_s5 + $0x1c] ss:$12 sps:$4 sm:$0xff]   ;;  %v894_v21 = vld [vmem:[%s1585_s5 + $0x18] ss:$12 sps:$4 sm:$0xff]  }
  0x2c   :  { %v897_v22 = vld [vmem:[%s1585_s5 + $0x20] ss:$12 sps:$4 sm:$0xff]   ;;  %v229_v34 = vsub.s32 0, %v1170_v33  ;;  %v1173_v35 = vld [vmem:[#allocation5] sm:$0x7]  ;;  %vm771_vm4 = vcmask 261248  }
  0x2d   :  { %v813_v24 = vld [vmem:[%s1584_s4] ss:$0 sm:$0xff]  ;;  %s1021_s20 = smov [#allocation7]  }
  0x2e   :  { %845 = vmatpush3.bf16.msra.mxu0 %v885_v2  ;;  %857 = vmatpush3.bf16.msra.mxu1 %v889_v8  ;;  %v230_v36 = vrot.slane %v1173_v35, %v229_v34  ;;  %s783_s21 = sshll.u32 %s1021_s20, 4  ;;  %s784_s21 = int_to_ptr.vmem [resolvable:$true] %s783_s21 }
  0x2f   :  { %846 = vmatprep.subr.bf16.mxu0 %v1017_v0  ;;  %277 = vmatprep.subr.bf16.mxu1 %v892_v17  ;;  %s963_s22 = scalar_lea.vmem %s784_s21, 128  ;;  %p968_p3 = scmp.lt.s32.totalorder %s784_s21, %s784_s21 }
  0x30   :  { %p964_p2 = scmp.ne.s32.totalorder %s784_s21, %s963_s22  ;;  %p969_p4 = scmp.lt.s32.totalorder %s963_s22, %s963_s22 }
  0x32   :  { %847 = vmatpush3.bf16.msra.mxu0 %v886_v3  ;;  %v237_v3 = vsub.s32 2, %v1170_v33  ;;  %p970_p5 = por %p969_p4, %p968_p3 }
  0x33   :  { %848 = vmatprep.subr.bf16.mxu0 %v1017_v0 }
  0x34   :  { %v238_v7 = vrot.slane %v1173_v35, %v237_v3  ;;  %p971_p6 = pnand %p970_p5, %p964_p2 }
  0x36   :  { %849 = vmatpush3.bf16.msra.mxu0 %v887_v4 }
  0x37   :  { %862 = vmatprep.subr.bf16.mxu0 %v1017_v0 }
  0x39   :  { %851 = vmatmul.mubr.msk.bf16.vlgmr.msra.gmra.mrb[0].mxu0 %vm102_vm1, %v62_v6 }
  0x3a   :  { %866 = vmatprep.mubr.msk.bf16.mxu0 %vm1018_vm0, %v1017_v0  ;;  %863 = vmatpush3.bf16.msra.mxu0 %v893_v19 }
  0x3b   :  { %864 = vmatprep.subr.bf16.mxu0 %v1017_v0 }
  0x3e   :  { %865 = vmatpush3.bf16.msra.mxu0 %v897_v22  ;;  %v898_v22 = vld [vmem:[%s1587_s7] sm:$0xff]  }
 0x10c   :  { %v140_v10 = vpop.f32.mrb[0].mxu0 }
 0x10d   :  { %v141_v11 = vadd.f32 %v807_v9, %v140_v10  ;;  %v852_v12 = vpop.f32.mrb[1].mxu0 }
 0x10e   :  { %v143_v13 = vpop.f32.mrb[2].mxu0 }
 0x10f   :  { %899 = vtanh.f32 %v141_v11  ;;  %v853_v14 = vpop.f32.mrb[3].mxu0 }
 0x119   :  { %v900_v15 = vpop.eup %899 }
 0x11a   :  { %v147_v16 = vpack.c.bf16 %v900_v15, %v900_v15 }
 0x11c   :  { %859 = vmatmul.mubr.msk.bf16.vlgmr.msra.gmra.mrb[0].mxu1 %vm171_vm2, %v147_v16 }
 0x11d   :  { %278 = vmatpush1.bf16.msra.mxu1 %v890_v18  ;;  %309 = vmatprep.mubr.bf16.mxu1 %v1019_v23 }
 0x11e   :  { %279 = vmatprep.subr.bf16.mxu1 %v896_v20 }
 0x121   :  { %280 = vmatpush1.bf16.msra.mxu1 %v894_v21 }
 0x122   :  { %870 = vmatprep.subr.bf16.mxu1 %v1017_v0 }
 0x1ef   :  { %v209_v25 = vpop.f32.mrb[0].mxu1 }
 0x1f0   :  { %v210_v26 = vadd.f32 %v813_v24, %v209_v25  ;;  %v860_v27 = vpop.f32.mrb[1].mxu1 }
 0x1f1   :  { %v212_v28 = vpop.f32.mrb[2].mxu1 }
 0x1f2   :  { %901 = vtanh.f32 %v210_v26  ;;  %v861_v29 = vpop.f32.mrb[3].mxu1 }
 0x1fc   :  { %v902_v30 = vpop.eup %901 }
 0x1fd   :  { %v216_v31 = vpack.c.bf16 %v902_v30, %v902_v30 }
 0x1ff   :  { %823 = vmatmul.mubr.msk.bf16.vlgmr.msra.gmra.mrb[4].mxu1 %vm171_vm2, %v216_v31  ;;  %867 = vmatmul.mubr.msk.bf16.vlgmr.msra.gmra.mrb[4].mxu0 %vm171_vm2, %v216_v31 }
 0x200   :  { %872 = vmatprep.mubr.msk.bf16.mxu1 %vm1018_vm0, %v1017_v0  ;;  %871 = vmatpush3.bf16.msra.mxu1 %v898_v22 }
 0x2d2   :  { %v311_v37 = vpop.f32.mrb[4].mxu1  ;;  %v352_v38 = vpop.f32.mrb[4].mxu0 }
 0x2d3   :  { %v1176_v39 = vadd.f32 %v311_v37, %v230_v36  ;;  %v1178_v40 = vpop.f32.mrb[5].mxu1  ;;  %v868_v41 = vpop.f32.mrb[5].mxu0  ;;  %v1228_v11 = vadd.f32 %v352_v38, %v238_v7  ;;  %v233_v38 = vsub.s32 1, %v1170_v33 }
 0x2d4   :  { %v315_v42 = vpop.f32.mrb[6].mxu1  ;;  %v355_v43 = vpop.f32.mrb[6].mxu0 }
 0x2d5   :  { %v316_v44 = vpop.f32.mrb[7].mxu1  ;;  %v869_v45 = vpop.f32.mrb[7].mxu0  ;;  %v367_v46 = vmul.f32 %v1176_v39, %v1176_v39  ;;  %766 = vst.msk [vmem:[#allocation8] sm:$0xff] %vm361_vm3, %v1176_v39  ;;  %v360_v15 = vmul.f32 %v1228_v11, %v1228_v11  ;;  %v234_v41 = vrot.slane %v1173_v35, %v233_v38  ;;  %v422_v33 = vmul.f32 %v1228_v11, %v1176_v39 }
 0x2d6   :  { %v825_v44 = vld [vmem:[%s1588_s8] ss:$0 sm:$0xff]  ;;  %s1020_s8 = smov 16  }
 0x2d7   :  { %v368_v47 = vsel %vm361_vm3, %v367_v46, 0.0  ;;  %v362_v16 = vsel %vm361_vm3, %v360_v15, 0.0  ;;  %v1258_v42 = vadd.f32 %v1178_v40, %v234_v41  ;;  %v423_v35 = vsel %vm361_vm3, %v422_v33, 0.0 }
 0x2d8   :  { %369 = vadd.xlane.f32.xlu0 %v368_v47 }
 0x2d9   :  { %v358_v43 = vmul.f32 1.442695, %v1258_v42 }
 0x365   :  { %v1185_v48 = vpop.xlane.xlu0 %369 }
 0x366   :  { %903 = vrcp.f32 %v1185_v48 }
 0x370   :  { %v904_v49 = vpop.eup %903 }
 0x371   :  { %v1188_v50 = vmul.f32 2.0, %v904_v49 }
 0x373   :  { %v373_v51 = vmul.f32 %v1188_v50, %v1176_v39 }
 0x375   :  { %v374_v52 = vmul.f32 %v373_v51, %v1185_v48 }
 0x377   :  { %v1194_v53 = vsub.f32 %v1176_v39, %v374_v52 }
 0x379   :  { %v376_v54 = vmul.f32 %v1194_v53, %v1194_v53  ;;  %v451_v40 = vmul.f32 %v1194_v53, %v1176_v39 }
 0x37b   :  { %v377_v55 = vsel %vm361_vm3, %v376_v54, 0.0 }
 0x37c   :  { %378 = vadd.xlane.f32.xlu0 %v377_v55  ;;  %v452_v55 = vsel %vm361_vm3, %v451_v40, 0.0  ;;  %v482_v40 = vsub.f32 0.0, %v1188_v50 }
 0x409   :  { %v1199_v56 = vpop.xlane.xlu0 %378 }
 0x40a   :  { %905 = vrcp.f32 %v1199_v56 }
 0x414   :  { %v906_v57 = vpop.eup %905 }
 0x415   :  { %v1202_v58 = vmul.f32 2.0, %v906_v57 }
 0x417   :  { %v382_v59 = vmul.f32 %v1202_v58, %v1194_v53 }
 0x419   :  { %v383_v60 = vmul.f32 %v382_v59, %v1199_v56 }
 0x41b   :  { %v1208_v61 = vsub.f32 %v1194_v53, %v383_v60 }
 0x41d   :  { %v385_v62 = vmul.f32 %v1208_v61, %v1208_v61  ;;  %v392_v0 = vmul.f32 %v1208_v61, %v1176_v39  ;;  %v468_v57 = vmul.f32 %v1208_v61, %v1194_v53 }
 0x41f   :  { %v386_v63 = vsel %vm361_vm3, %v385_v62, 0.0  ;;  %v393_v1 = vsel %vm361_vm3, %v392_v0, 0.0  ;;  %v469_v60 = vsel %vm361_vm3, %v468_v57, 0.0 }
 0x420   :  { %387 = vadd.xlane.f32.xlu1 %v386_v63 }
 0x424   :  { %394 = vadd.xlane.f32.xlu1 %v393_v1 }
 0x4ad   :  { %v1216_v2 = vpop.xlane.xlu1 %387 }
 0x4ae   :  { %1596 = vst [vmem:[#allocation15_spill] sm:$0xff] %v1216_v2  ;;  %907 = vrcp.f32 %v1216_v2 }
 0x4b1   :  { %v1225_v9 = vpop.xlane.xlu1 %394 }
 0x4b8   :  { %v908_v4 = vpop.eup %907 }
 0x4b9   :  { %v1220_v6 = vmul.f32 2.0, %v908_v4 }
 0x4bb   :  { %v391_v8 = vmul.f32 %v1220_v6, %v1208_v61  ;;  %v1332_v33 = vsub.f32 0.0, %v1220_v6 }
 0x4bd   :  { %v396_v10 = vmul.f32 %v1225_v9, %v391_v8 }
 0x4bf   :  { %v397_v12 = vsub.f32 %v1176_v39, %v396_v10 }
 0x4c1   :  { %v398_v13 = vmul.f32 %v397_v12, %v1194_v53 }
 0x4c3   :  { %v399_v14 = vsel %vm361_vm3, %v398_v13, 0.0 }
 0x4c4   :  { %400 = vadd.xlane.f32.xlu0 %v399_v14 }
 0x4c8   :  { %363 = vadd.xlane.f32.xlu0 %v362_v16 }
 0x551   :  { %v401_v17 = vpop.xlane.xlu0 %400 }
 0x552   :  { %v402_v18 = vmul.f32 %v401_v17, %v382_v59 }
 0x554   :  { %v403_v19 = vsub.f32 %v397_v12, %v402_v18 }
 0x555   :  { %v1243_v28 = vpop.xlane.xlu0 %363 }
 0x556   :  { %v404_v20 = vmul.f32 %v403_v19, %v1176_v39  ;;  %909 = vrcp.f32 %v1243_v28 }
 0x557   :  { %911 = vpow2.f32 %v358_v43 }
 0x558   :  { %v405_v21 = vsel %vm361_vm3, %v404_v20, 0.0 }
 0x559   :  { %406 = vadd.xlane.f32.xlu1 %v405_v21 }
 0x560   :  { %v910_v29 = vpop.eup %909 }
 0x561   :  { %v1246_v30 = vmul.f32 2.0, %v910_v29  ;;  %v912_v54 = vpop.eup %911 }
 0x562   :  { %v417_v59 = vmul.f32 %v912_v54, %v1228_v11  ;;  %v446_v1 = vmul.f32 %v912_v54, %v1176_v39  ;;  %v463_v7 = vmul.f32 %v912_v54, %v1194_v53  ;;  %v476_v12 = vmul.f32 %v912_v54, %v1208_v61 }
 0x563   :  { %1597 = vst [vmem:[#allocation16_spill] sm:$0xff] %v1246_v30  ;;  %v410_v31 = vmul.f32 %v1246_v30, %v1228_v11 }
 0x564   :  { %v426_v62 = vmul.f32 %v417_v59, %v1176_v39  ;;  %v442_v0 = vmul.f32 %v417_v59, %v1208_v61  ;;  %v455_v4 = vmul.f32 %v446_v1, %v1194_v53  ;;  %v464_v10 = vmul.f32 %v463_v7, %v1194_v53 }
 0x565   :  { %v477_v14 = vmul.f32 %v476_v12, %v1208_v61  ;;  %v459_v38 = vmul.f32 %v446_v1, %v1208_v61 }
 0x566   :  { %v427_v63 = vsel %vm361_vm3, %v426_v62, 0.0  ;;  %v443_v3 = vsel %vm361_vm3, %v442_v0, 0.0  ;;  %v456_v8 = vsel %vm361_vm3, %v455_v4, 0.0  ;;  %v465_v13 = vsel %vm361_vm3, %v464_v10, 0.0 }
 0x567   :  { %v478_v15 = vsel %vm361_vm3, %v477_v14, 0.0  ;;  %v460_v41 = vsel %vm361_vm3, %v459_v38, 0.0  ;;  %v567_v62 = vmul.f32 %v1202_v58, %v1199_v56 }
 0x5e6   :  { %v407_v23 = vpop.xlane.xlu1 %406 }
 0x5e7   :  { %v408_v24 = vmul.f32 %v407_v23, %v373_v51  ;;  %v430_v23 = vmul.f32 %v1194_v53, %v1228_v11 }
 0x5e9   :  { %v409_v25 = vsub.f32 %v403_v19, %v408_v24  ;;  %v431_v24 = vsel %vm361_vm3, %v430_v23, 0.0 }
 0x5eb   :  { %v411_v26 = vmul.f32 %v409_v25, %v1228_v11 }
 0x5ed   :  { %v412_v27 = vsel %vm361_vm3, %v411_v26, 0.0 }
 0x5ee   :  { %413 = vadd.xlane.f32.xlu1 %v412_v27  ;;  %v418_v27 = vmul.f32 %v417_v59, %v1228_v11 }
 0x5f0   :  { %v419_v29 = vsel %vm361_vm3, %v418_v27, 0.0 }
 0x67b   :  { %v414_v32 = vpop.xlane.xlu1 %413 }
 0x67c   :  { %v415_v34 = vmul.f32 %v414_v32, %v410_v31  ;;  %v434_v31 = vmul.f32 %v417_v59, %v1194_v53  ;;  %v504_v53 = vsel %vm361_vm3, %v912_v54, 0.0 }
 0x67e   :  { %v1250_v36 = vsub.f32 %v409_v25, %v415_v34  ;;  %v438_v25 = vmul.f32 %v1208_v61, %v1228_v11  ;;  %v435_v32 = vsel %vm361_vm3, %v434_v31, 0.0  ;;  %v447_v34 = vmul.f32 %v446_v1, %v1176_v39 }
 0x67f   :  { %v472_v11 = vmul.f32 %v463_v7, %v1208_v61  ;;  %v756_v39 = vsel %vm361_vm3, %v1258_v42, 0.0  ;;  %v498_v42 = vmul.f32 %v1225_v9, %v1188_v50 }
 0x680   :  { %v674_v37 = vpack.c.bf16 %v1250_v36, %v1250_v36  ;;  %v752_v16 = vmul.f32 %v1250_v36, %v1250_v36  ;;  %v439_v26 = vsel %vm361_vm3, %v438_v25, 0.0 }
 0x681   :  { %v473_v43 = vsel %vm361_vm3, %v472_v11, 0.0 }
 0x682   :  { %873 = vmatmul.mubr.msk.bf16.vlgmr.msra.gmra.mrb[8].mxu1 %vm361_vm3, %v674_v37  ;;  %v753_v17 = vsel %vm361_vm3, %v752_v16, 0.0  ;;  %v448_v37 = vsel %vm361_vm3, %v447_v34, 0.0 }
 0x755   :  { %v727_v45 = vpop.f32.mrb[8].mxu1 }
 0x756   :  { %v728_v46 = vadd.f32 %v825_v44, %v727_v45  ;;  %v874_v47 = vpop.f32.mrb[9].mxu1 }
 0x757   :  { %v730_v49 = vpop.f32.mrb[10].mxu1 }
 0x758   :  { %v875_v51 = vpop.f32.mrb[11].mxu1  ;;  %v733_v52 = vsel %vm102_vm1, %v728_v46, -inf }
 0x759   :  { %734 = vmax.xlane.f32.xlu0 %v733_v52 }
 0x75d   :  { %424 = vadd.xlane.f32.xlu0 %v423_v35 }
 0x761   :  { %453 = vadd.xlane.f32.xlu0 %v452_v55  ;;  %v1340_v55 = vmul.f32 %v1225_v9, %v1220_v6 }
 0x765   :  { %470 = vadd.xlane.f32.xlu0 %v469_v60  ;;  %v550_v60 = vmul.f32 %v1188_v50, %v1185_v48 }
 0x769   :  { %428 = vadd.xlane.f32.xlu0 %v427_v63 }
 0x76d   :  { %444 = vadd.xlane.f32.xlu0 %v443_v3  ;;  %v1357_v3 = vmul.f32 %v1340_v55, %v1188_v50 }
 0x771   :  { %457 = vadd.xlane.f32.xlu0 %v456_v8  ;;  %v526_v8 = vmul.f32 %v1246_v30, %v1243_v28 }
 0x775   :  { %466 = vadd.xlane.f32.xlu0 %v465_v13 }
 0x779   :  { %479 = vadd.xlane.f32.xlu0 %v478_v15 }
 0x77d   :  { %754 = vadd.xlane.f32.xlu0 %v753_v17 }
 0x7e6   :  { %v735_v18 = vpop.xlane.xlu0 %734 }
 0x7e7   :  { %v736_v19 = vsub.f32 %v728_v46, %v735_v18  ;;  %v487_v46 = vsub.f32 0.0, %v1202_v58 }
 0x7e9   :  { %v737_v20 = vmul.f32 1.442695, %v736_v19 }
 0x7ea   :  { %v425_v44 = vpop.xlane.xlu0 %424 }
 0x7eb   :  { %913 = vpow2.f32 %v737_v20  ;;  %v481_v52 = vmul.f32 %v425_v44, %v1246_v30  ;;  %v545_v14 = vmul.f32 %v425_v44, %v1188_v50 }
 0x7ed   :  { %v1342_v57 = vmul.f32 %v482_v40, %v481_v52 }
 0x7ee   :  { %v1315_v45 = vpop.xlane.xlu0 %453 }
 0x7ef   :  { %v489_v61 = vmul.f32 %v1315_v45, %v1188_v50  ;;  %v527_v10 = vmul.f32 %v1342_v57, %v425_v44  ;;  %v533_v12 = vmul.f32 %v1342_v57, %v1185_v48  ;;  %v564_v15 = vmul.f32 %v1315_v45, %v1202_v58 }
 0x7f0   :  { %v485_v28 = vmul.f32 %v1342_v57, %v1315_v45  ;;  %v492_v18 = vmul.f32 %v1342_v57, %v1225_v9 }
 0x7f1   :  { %v1320_v47 = vmul.f32 %v489_v61, %v487_v46  ;;  %v534_v27 = vadd.f32 %v533_v12, %v481_v52 }
 0x7f2   :  { %v1322_v49 = vpop.xlane.xlu0 %470 }
 0x7f3   :  { %v499_v51 = vmul.f32 %v1320_v47, %v1322_v49  ;;  %v551_v0 = vmul.f32 %v1320_v47, %v1315_v45  ;;  %v555_v13 = vmul.f32 %v1320_v47, %v1199_v56  ;;  %v1377_v17 = vmul.f32 %v1322_v49, %v1220_v6 }
 0x7f4   :  { %v1399_v38 = vmul.f32 %v1340_v55, %v1320_v47 }
 0x7f5   :  { %v1291_v21 = vpop.eup %913  ;;  %v500_v35 = vadd.f32 %v499_v51, %v498_v42  ;;  %1598 = vst [vmem:[#allocation17_spill] sm:$0xff] %v1377_v17  ;;  %v552_v20 = vadd.f32 %v551_v0, %v550_v60 }
 0x7f6   :  { %v739_v22 = vsel %vm102_vm1, %v1291_v21, 0.0  ;;  %v1351_v63 = vpop.xlane.xlu0 %428 }
 0x7f7   :  { %740 = vadd.xlane.f32.xlu1 %v739_v22  ;;  %v1345_v59 = vmul.f32 %v500_v35, %v1332_v33  ;;  %v508_v11 = vmul.f32 %v1342_v57, %v1351_v63 }
 0x7f9   :  { %v553_v16 = vmul.f32 %v1345_v59, %v1225_v9  ;;  %v557_v48 = vmul.f32 %v1345_v59, %v1322_v49  ;;  %v559_v23 = vmul.f32 %v1345_v59, %v1216_v2 }
 0x7fa   :  { %v1393_v31 = vpop.xlane.xlu0 %444 }
 0x7fb   :  { %432 = vadd.xlane.f32.xlu1 %v431_v24 }
 0x7ff   :  { %440 = vadd.xlane.f32.xlu1 %v439_v26  ;;  %v528_v26 = vadd.f32 %v527_v10, %v526_v8  ;;  %v1431_v8 = vpop.xlane.xlu0 %457 }
 0x803   :  { %420 = vadd.xlane.f32.xlu1 %v419_v29  ;;  %v556_v29 = vadd.f32 %v555_v13, %v489_v61  ;;  %v560_v61 = vadd.f32 %v559_v23, %v500_v35  ;;  %v1453_v23 = vmul.f32 %v1320_v47, %v1431_v8 }
 0x807   :  { %436 = vadd.xlane.f32.xlu1 %v435_v32 }
 0x80b   :  { %449 = vadd.xlane.f32.xlu1 %v448_v37  ;;  %v554_v37 = vadd.f32 %v553_v16, %v552_v20 }
 0x80f   :  { %461 = vadd.xlane.f32.xlu1 %v460_v41  ;;  %v1403_v41 = vmul.f32 %v1377_v17, %v1202_v58 }
 0x813   :  { %474 = vadd.xlane.f32.xlu1 %v473_v43 }
 0x817   :  { %505 = vadd.xlane.f32.xlu1 %v504_v53  ;;  %v558_v53 = vadd.f32 %v557_v48, %v556_v29 }
 0x819   :  { %v1444_v48 = vmul.f32 %v558_v53, %v1202_v58 }
 0x81b   :  { %757 = vadd.xlane.f32.xlu1 %v756_v39 }
 0x82c   :  { %768 = vrot.lane.b32.xlu1 %v1250_v36, %s1020_s8  ;;  %v502_v36 = vmul.f32 %v1322_v49, %v1202_v58 }
 0x82e   :  { %v1336_v54 = vmul.f32 %v502_v36, %v1332_v33 }
 0x830   :  { %v565_v4 = vmul.f32 %v1336_v54, %v1225_v9  ;;  %v568_v7 = vmul.f32 %v1336_v54, %v1322_v49  ;;  %v570_v19 = vmul.f32 %v1336_v54, %v1216_v2 }
 0x832   :  { %v1389_v24 = vadd.f32 %v565_v4, %v564_v15  ;;  %v1391_v25 = vadd.f32 %v568_v7, %v567_v62  ;;  %v1407_v39 = vadd.f32 %v570_v19, %v502_v36  ;;  %v603_v4 = vmul.f32 %v554_v37, %v1188_v50 }
 0x833   :  { %v1429_v7 = vmul.f32 %v554_v37, %v1320_v47 }
 0x834   :  { %v1411_v51 = vmul.f32 %v1389_v24, %v1320_v47  ;;  %v1415_v42 = vmul.f32 %v1389_v24, %v1345_v59  ;;  %v1419_v52 = vmul.f32 %v1391_v25, %v1336_v54 }
 0x884   :  { %v741_v1 = vpop.xlane.xlu1 %740 }
 0x885   :  { %915 = vrcp.f32 %v741_v1 }
 0x888   :  { %v433_v22 = vpop.xlane.xlu1 %432 }
 0x889   :  { %v484_v32 = vmul.f32 %v433_v22, %v1246_v30  ;;  %v546_v34 = vmul.f32 %v1320_v47, %v433_v22  ;;  %v561_v0 = vmul.f32 %v433_v22, %v1202_v58 }
 0x88b   :  { %v486_v43 = vadd.f32 %v485_v28, %v484_v32  ;;  %v547_v62 = vadd.f32 %v546_v34, %v545_v14 }
 0x88c   :  { %v441_v44 = vpop.xlane.xlu1 %440 }
 0x88d   :  { %v1421_v40 = vmul.f32 %v487_v46, %v486_v43  ;;  %v491_v60 = vmul.f32 %v441_v44, %v1246_v30  ;;  %v548_v36 = vmul.f32 %v1345_v59, %v441_v44  ;;  %v562_v35 = vmul.f32 %v1336_v54, %v441_v44 }
 0x88e   :  { %v1437_v13 = vmul.f32 %v441_v44, %v1220_v6 }
 0x88f   :  { %v529_v10 = vmul.f32 %v1421_v40, %v433_v22  ;;  %v493_v46 = vadd.f32 %v492_v18, %v491_v60  ;;  %v494_v12 = vmul.f32 %v1421_v40, %v1322_v49  ;;  %v549_v15 = vadd.f32 %v548_v36, %v547_v62 }
 0x890   :  { %v1439_v14 = vadd.f32 %v562_v35, %v561_v0  ;;  %v421_v16 = vpop.xlane.xlu1 %420  ;;  %v535_v28 = vmul.f32 %v1421_v40, %v1315_v45  ;;  %v615_v18 = vmul.f32 %v554_v37, %v1345_v59  ;;  %v1449_v22 = vmul.f32 %v558_v53, %v1336_v54 }
 0x891   :  { %v495_v19 = vadd.f32 %v494_v12, %v493_v46  ;;  %v507_v20 = vmul.f32 %v421_v16, %v1246_v30  ;;  %v539_v29 = vmul.f32 %v1421_v40, %v1199_v56  ;;  %v1458_v45 = vmul.f32 %v560_v61, %v1220_v6 }
 0x892   :  { %v530_v32 = vadd.f32 %v529_v10, %v528_v26  ;;  %v607_v37 = vmul.f32 %v549_v15, %v1421_v40  ;;  %v650_v53 = vmul.f32 %v1437_v13, %v1342_v57  ;;  %v536_v36 = vadd.f32 %v535_v28, %v534_v27 }
 0x893   :  { %v1461_v34 = vmul.f32 %v1332_v33, %v495_v19  ;;  %v509_v60 = vadd.f32 %v508_v11, %v507_v20  ;;  %v623_v1 = vmul.f32 %v1439_v14, %v1246_v30  ;;  %v602_v56 = vmul.f32 %v549_v15, %v1342_v57 }
 0x894   :  { %v437_v35 = vpop.xlane.xlu1 %436  ;;  %v540_v0 = vadd.f32 %v539_v29, %v486_v43  ;;  %v599_v10 = vmul.f32 %v549_v15, %v1246_v30 }
 0x895   :  { %v531_v61 = vmul.f32 %v1461_v34, %v441_v44  ;;  %v543_v26 = vmul.f32 %v1461_v34, %v1216_v2  ;;  %v537_v33 = vmul.f32 %v1461_v34, %v1225_v9  ;;  %v510_v62 = vmul.f32 %v1421_v40, %v437_v35 }
 0x896   :  { %v541_v27 = vmul.f32 %v1461_v34, %v1322_v49  ;;  %v1477_v11 = vmul.f32 %v623_v1, %v437_v35  ;;  %v652_v44 = vadd.f32 %v1357_v3, %v650_v53  ;;  %v604_v2 = vadd.f32 %v603_v4, %v602_v56  ;;  %v916_v56 = vpop.eup %915 }
 0x897   :  { %v532_v46 = vadd.f32 %v531_v61, %v530_v32  ;;  %v538_v12 = vadd.f32 %v537_v33, %v536_v36  ;;  %v511_v28 = vadd.f32 %v510_v62, %v509_v60  ;;  %v544_v20 = vadd.f32 %v543_v26, %v495_v19 }
 0x898   :  { %v542_v5 = vadd.f32 %v541_v27, %v540_v0  ;;  %v450_v17 = vpop.xlane.xlu1 %449  ;;  %v614_v9 = vmul.f32 %v549_v15, %v1461_v34  ;;  %v512_v19 = vmul.f32 %v1461_v34, %v1393_v31  ;;  %v1494_v0 = vpop.xlane.xlu0 %466 }
 0x899   :  { %v576_v43 = vmul.f32 %v532_v46, %v1246_v30  ;;  %v578_v29 = vmul.f32 %v532_v46, %v1342_v57  ;;  %v579_v49 = vmul.f32 %v538_v12, %v1188_v50  ;;  %v583_v1 = vmul.f32 %v532_v46, %v1421_v40 }
 0x89a   :  { %v584_v32 = vmul.f32 %v538_v12, %v1320_v47  ;;  %v590_v60 = vmul.f32 %v532_v46, %v1461_v34  ;;  %v591_v3 = vmul.f32 %v538_v12, %v1345_v59  ;;  %v586_v15 = vmul.f32 %v542_v5, %v1202_v58 }
 0x89b   :  { %v577_v4 = vmul.f32 %v576_v43, %v421_v16  ;;  %v580_v53 = vadd.f32 %v579_v49, %v578_v29  ;;  %v593_v36 = vmul.f32 %v542_v5, %v1336_v54  ;;  %v513_v33 = vadd.f32 %v512_v19, %v511_v28 }
 0x89c   :  { %v585_v61 = vadd.f32 %v584_v32, %v583_v1  ;;  %v592_v26 = vadd.f32 %v591_v3, %v590_v60  ;;  %v514_v62 = vmul.f32 %v450_v17, %v1188_v50  ;;  %v462_v47 = vpop.xlane.xlu1 %461  ;;  %v595_v46 = vmul.f32 %v544_v20, %v1220_v6 }
 0x89d   :  { %v581_v27 = vmul.f32 %v580_v53, %v1351_v63  ;;  %v605_v12 = vmul.f32 %v604_v2, %v450_v17  ;;  %v518_v16 = vmul.f32 %v1345_v59, %v462_v47  ;;  %v616_v5 = vadd.f32 %v615_v18, %v614_v9 }
 0x89e   :  { %v587_v43 = vadd.f32 %v586_v15, %v585_v61  ;;  %v594_v29 = vadd.f32 %v593_v36, %v592_v26  ;;  %v515_v49 = vadd.f32 %v514_v62, %v513_v33  ;;  %v609_v1 = vadd.f32 %v1429_v7, %v607_v37 }
 0x89f   :  { %v582_v30 = vadd.f32 %v581_v27, %v577_v4  ;;  %v1500_v28 = vmul.f32 %v652_v44, %v462_v47  ;;  %v631_v32 = vmul.f32 %v1439_v14, %v1421_v40  ;;  %v618_v2 = vadd.f32 %v1449_v22, %v616_v5 }
 0x8a0   :  { %v588_v60 = vmul.f32 %v587_v43, %v437_v35  ;;  %v596_v3 = vadd.f32 %v595_v46, %v594_v29  ;;  %v517_v19 = vadd.f32 %v1453_v23, %v515_v49  ;;  %v475_v17 = vpop.xlane.xlu1 %474  ;;  %v520_v20 = vmul.f32 %v1494_v0, %v1202_v58  ;;  %v1514_v23 = vpop.xlane.xlu0 %479 }
 0x8a1   :  { %v600_v18 = vmul.f32 %v599_v10, %v1351_v63  ;;  %v522_v9 = vmul.f32 %v1336_v54, %v475_v17  ;;  %v638_v7 = vmul.f32 %v1439_v14, %v1461_v34  ;;  %v620_v4 = vadd.f32 %v1458_v45, %v618_v2 }
 0x8a2   :  { %v589_v37 = vadd.f32 %v588_v60, %v582_v30  ;;  %v597_v44 = vmul.f32 %v596_v3, %v1393_v31  ;;  %v519_v35 = vadd.f32 %v518_v16, %v517_v19  ;;  %v611_v22 = vadd.f32 %v1444_v48, %v609_v1  ;;  %v1600_v3 = vld [vmem:[#allocation16_spill] sm:$0xff] }
 0x8a3   :  { %v640_v53 = vadd.f32 %v1415_v42, %v638_v7  ;;  %v655_v63 = vmul.f32 %v1437_v13, %v1421_v40  ;;  %v743_v10 = vmul.f32 %v916_v56, %v1291_v21  ;;  %v621_v36 = vmul.f32 %v620_v4, %v462_v47 }
 0x8a4   :  { %v598_v15 = vadd.f32 %v597_v44, %v589_v37  ;;  %v506_v61 = vpop.xlane.xlu1 %505  ;;  %v521_v30 = vadd.f32 %v520_v20, %v519_v35  ;;  %v662_v26 = vmul.f32 %v1437_v13, %v1461_v34  ;;  %v643_v33 = vmul.f32 %v1407_v39, %v1220_v6  ;;  %v1601_v20 = vld [vmem:[#allocation17_spill] sm:$0xff]  ;;  %v1602_v37 = vld [vmem:[#allocation14_spill] sm:$0xff] }
 0x8a5   :  { %v642_v45 = vadd.f32 %v1419_v52, %v640_v53  ;;  %v657_v48 = vadd.f32 %v1399_v38, %v655_v63  ;;  %v744_v42 = vadd.f32 1e-10, %v743_v10  ;;  %764 = vst.msk [vmem:[#allocation7] sm:$0xff] %vm102_vm1, %v743_v10  ;;  %v524_v21 = vmul.f32 %v1514_v23, %v1220_v6 }
 0x8a6   :  { %v601_v40 = vadd.f32 %v600_v18, %v598_v15  ;;  %v626_v56 = vmul.f32 %v1439_v14, %v1342_v57  ;;  %v523_v62 = vadd.f32 %v522_v9, %v521_v30  ;;  %v627_v34 = vmul.f32 %v1389_v24, %v1188_v50  ;;  %v755_v15 = vpop.xlane.xlu0 %754 }
 0x8a7   :  { %v644_v52 = vadd.f32 %v643_v33, %v642_v45  ;;  %v659_v47 = vadd.f32 %v1403_v41, %v657_v48  ;;  %917 = vlog2.f32 %v744_v42  ;;  %v612_v38 = vmul.f32 %v611_v22, %v1431_v8 }
 0x8a8   :  { %v606_v39 = vadd.f32 %v605_v12, %v601_v40  ;;  %v633_v27 = vadd.f32 %v1411_v51, %v631_v32  ;;  %v525_v46 = vadd.f32 %v524_v21, %v523_v62  ;;  %v758_v16 = vpop.xlane.xlu1 %757  ;;  %v634_v43 = vmul.f32 %v1391_v25, %v1202_v58  ;;  %v1599_v58 = vld [vmem:[#allocation15_spill] sm:$0xff] }
 0x8a9   :  { %v645_v29 = vmul.f32 %v644_v52, %v475_v17  ;;  %v660_v57 = vmul.f32 %v659_v47, %v475_v17  ;;  %v628_v49 = vadd.f32 %v627_v34, %v626_v56  ;;  %v663_v41 = vmul.f32 %v1340_v55, %v1345_v59 }
 0x8aa   :  { %v613_v14 = vadd.f32 %v612_v38, %v606_v39  ;;  %v671_v5 = vmul.f32 2.0, %v525_v46  ;;  %v635_v24 = vadd.f32 %v634_v43, %v633_v27  ;;  %v575_v25 = vmul.f32 %v1220_v6, %v1599_v58 }
 0x8ab   :  { %v629_v32 = vmul.f32 %v628_v49, %v1431_v8  ;;  %v664_v60 = vadd.f32 %v663_v41, %v662_v26  ;;  %v647_v19 = vmul.f32 %v1437_v13, %v1600_v3  ;;  %v665_v55 = vmul.f32 %v1601_v20, %v1336_v54 }
 0x8ac   :  { %v622_v50 = vadd.f32 %v621_v36, %v613_v14  ;;  %v672_v12 = vsub.f32 %v506_v61, %v671_v5  ;;  %v769_v1 = vpop.permute.xlu1 %768  ;;  %v636_v17 = vmul.f32 %v635_v24, %v1494_v0  ;;  %v667_v35 = vmul.f32 %v575_v25, %v1220_v6 }
 0x8ad   :  { %772 = vst.msk [vmem:[#allocation8] sm:$0xff] %vm771_vm4, %v769_v1  ;;  %v666_v7 = vadd.f32 %v665_v55, %v664_v60  ;;  %v648_v8 = vmul.f32 %v647_v19, %v1393_v31  ;;  %v759_v36 = vsub.f32 0.0, %v758_v16 }
 0x8ae   :  { %v625_v51 = vadd.f32 %v1477_v11, %v622_v50 }
 0x8af   :  { %v668_v22 = vadd.f32 %v667_v35, %v666_v7 }
 0x8b0   :  { %v630_v2 = vadd.f32 %v629_v32, %v625_v51 }
 0x8b1   :  { %v918_v59 = vpop.eup %917  ;;  %v669_v54 = vmul.f32 %v668_v22, %v1514_v23 }
 0x8b2   :  { %v637_v18 = vadd.f32 %v636_v17, %v630_v2  ;;  %v746_v9 = vmul.f32 0.6931472, %v918_v59 }
 0x8b4   :  { %v646_v11 = vadd.f32 %v645_v29, %v637_v18  ;;  %v747_v44 = vmul.f32 %v746_v9, %v1602_v37 }
 0x8b6   :  { %v649_v4 = vadd.f32 %v648_v8, %v646_v11  ;;  %v748_v13 = vsel %vm102_vm1, %v747_v44, 0.0 }
 0x8b7   :  { %749 = vadd.xlane.f32.xlu0 %v748_v13 }
 0x8b8   :  { %v654_v0 = vadd.f32 %v1500_v28, %v649_v4 }
 0x8ba   :  { %v661_v53 = vadd.f32 %v660_v57, %v654_v0 }
 0x8bc   :  { %v670_v63 = vadd.f32 %v669_v54, %v661_v53 }
 0x8be   :  { %v673_v10 = vadd.f32 %v672_v12, %v670_v63 }
 0x8c0   :  { %v760_v61 = vadd.f32 %v755_v15, %v673_v10 }
 0x8c2   :  { %v761_v31 = vadd.f32 %v760_v61, %v759_v36 }
 0x8c3   :  { %974 = shalt.err (!%p971_p6)
}
 0x8c4   :  { %s975_s25 = scalar_lea.hbm %s1589_s9, 128 }
 0x8c5   :  { %p976_p7 = scmp.ne.s32.totalorder %s1589_s9, %s975_s25  ;;  %p979_p8 = scmp.lt.u32.totalorder %s975_s25, %s1589_s9 }
 0x8c7   :  { %p981_p9 = pnand %p979_p8, %p976_p7 }
 0x8c9   :  { %984 = shalt.err (!%p981_p9)
}
 0x8ca   :  { %786 = dma.vmem_to_hbm [thread:$0]  %s784_s21, 128, %s1589_s9, [#allocation4]   ;;  %v828_v6 = vadd.f32 -16.0, %v761_v31  ;;  %vm773_vm5 = vcmask 269568   ;;  %vm775_vm6 = vcmask 277768  }
 0x8cb   :  { %s1022_s3 = smov [#allocation8]  }
 0x8cc   :  { %s793_s11 = sshll.u32 %s1022_s3, 4  ;;  %v763_v30 = vmul.f32 0.5, %v828_v6  ;;  %s794_s11 = int_to_ptr.vmem [resolvable:$true] %s793_s11 }
 0x8cd   :  { %s985_s2 = scalar_lea.vmem %s794_s11, 128  ;;  %p990_p11 = scmp.lt.s32.totalorder %s794_s11, %s794_s11 }
 0x8ce   :  { %p986_p10 = scmp.ne.s32.totalorder %s794_s11, %s985_s2  ;;  %p991_p12 = scmp.lt.s32.totalorder %s985_s2, %s985_s2 }
 0x8d0   :  { %p992_p13 = por %p991_p12, %p990_p11 }
 0x8d2   :  { %p993_p0 = pnand %p992_p13, %p986_p10 }
 0x944   :  { %v750_v28 = vpop.xlane.xlu0 %749 }
 0x945   :  { %v751_v23 = vsub.f32 0.0, %v750_v28 }
 0x947   :  { %774 = vst.msk [vmem:[#allocation8] sm:$0xff] %vm773_vm5, %v751_v23 }
 0x948   :  { %776 = vst.msk [vmem:[#allocation8] sm:$0xff] %vm775_vm6, %v763_v30 }
 0x949   :  { %996 = shalt.err (!%p993_p0)
}
 0x94a   :  { %s997_s13 = scalar_lea.hbm %s1590_s10, 128 }
 0x94b   :  { %p998_p1 = scmp.ne.s32.totalorder %s1590_s10, %s997_s13  ;;  %p1001_p2 = scmp.lt.u32.totalorder %s997_s13, %s1590_s10 }
 0x94d   :  { %p1003_p3 = pnand %p1001_p2, %p998_p1 }
 0x94f   :  { %1006 = shalt.err (!%p1003_p3)
}
 0x950   :  { %796 = dma.vmem_to_hbm [thread:$0]  %s794_s11, 128, %s1590_s10, [#allocation9]  }
 0x951   :  { %1011 = dma.done.wait [#allocation4], 128  }
 0x952   :  { %1012 = vsyncadd [#allocation4], 4294967168 }
 0x953   :  { %1013 = dma.done.wait [#allocation9], 128  }
 0x954   :  { %1014 = vsyncadd [#allocation9], 4294967168 }
 0x955   :  { %803 = vsyncpa [#allocation3], 1 }
 0x956   :  { %804 = vsyncpa [#allocation6], 1 }
 0x957   :  { %805 = vsyncpa [#allocation4], 1 }
 0x958   :  { %806 = vsyncpa [#allocation9], 1 }

</bundles_post_ra>
